<compile_context>
chip_gen: v5e
topology: v5e:2x2
jax: 0.10.0
libtpu: 0.0.40
codegen_flags: <defaults>
</compile_context>

<pallas_src>
import functools

import jax
import jax.numpy as jnp
from jax.experimental import pallas as pl
from jax.experimental.pallas import tpu as pltpu

LANE = 128     # vreg lane width  -> pad feature dims to this
SUBLANE = 8    # vreg sublane width -> pad row dims to this


# ---------------------------------------------------------------------------
# Fused Pallas kernel: the entire IBGNN forward in one shot.
# ---------------------------------------------------------------------------
def _fused_ibgnn_kernel(x_ref, w_ref, b_ref, aff_ref, inv_ref, out_ref, *,
                        num_layers, n_pad, k_pad):
    f32 = jnp.float32
    cdt = x_ref.dtype  # MXU input dtype (bf16 on v6e/v7x, f32 on v5e)

    # --- slab layouts (all indices are static Python ints) -----------------
    # w_slab:  [0] = enc_w, then per branch (0=src, 1=dst), per layer:
    #          w1, w2, w_root
    # b_slab:  [0] = enc_b, then per branch, per layer: b1, b2
    def widx(branch, layer, which):          # which: 0=w1, 1=w2, 2=w_root
        return 1 + (branch * num_layers + layer) * 3 + which

    def bidx(branch, layer, which):          # which: 0=b1, 1=b2
        return 1 + (branch * num_layers + layer) * 2 + which

    # encoder: x_enc = x @ enc_w + enc_b                      [n_pad, fp]
    x_enc = (jnp.dot(x_ref[...], w_ref[0], preferred_element_type=f32)
             + b_ref[0:1, :])

    # layer-0 community pooling for BOTH branches in one matmul (x_enc shared)
    feat0_both = jnp.dot(inv_ref[...], x_enc.astype(cdt),
                         preferred_element_type=f32)          # [2*k_pad, fp]

    def run_branch(bi):
        # affiliate_times_scale for this branch                [n_pad, k_pad]
        s = aff_ref[bi * n_pad:(bi + 1) * n_pad, :]
        h = x_enc
        for li in range(num_layers):
            # community pooling:  feat = inv_A @ h             [k_pad, fp]
            if li == 0:
                feat = feat0_both[bi * k_pad:(bi + 1) * k_pad, :]
            else:
                inv_a = inv_ref[bi * k_pad:(bi + 1) * k_pad, :]
                feat = jnp.dot(inv_a, h.astype(cdt),
                               preferred_element_type=f32)
            i1 = widx(bi, li, 0)
            i2 = widx(bi, li, 1)
            ir = widx(bi, li, 2)
            j1 = bidx(bi, li, 0)
            j2 = bidx(bi, li, 1)
            # community MLP:  com = relu(feat@w1+b1)@w2+b2     [k_pad, fp]
            hid = jnp.maximum(
                jnp.dot(feat.astype(cdt), w_ref[i1],
                        preferred_element_type=f32) + b_ref[j1:j1 + 1, :],
                0.0)
            com = (jnp.dot(hid.astype(cdt), w_ref[i2],
                           preferred_element_type=f32) + b_ref[j2:j2 + 1, :])
            # ComLayer combine:  h = h @ W_root + S @ com      [n_pad, fp]
            h = (jnp.dot(h.astype(cdt), w_ref[ir], preferred_element_type=f32)
                 + jnp.dot(s, com.astype(cdt), preferred_element_type=f32))
            if li < num_layers - 1:
                h = jnp.maximum(h, 0.0)      # act (relu); dropout p=0 (eval)
        return h

    out_src = run_branch(0)
    out_dst = run_branch(1)
    out_ref[...] = ((out_src + out_dst) * 0.5).astype(out_ref.dtype)


# ---------------------------------------------------------------------------
# Padding / packing helpers (hoisted out of the hot path)
# ---------------------------------------------------------------------------
def _round_up(n, m):
    return ((n + m - 1) // m) * m


def _pad2(a, rows, cols, dtype=None):
    if dtype is not None:
        a = a.astype(dtype)
    r, c = a.shape
    if r == rows and c == cols:
        return a
    return jnp.pad(a, ((0, rows - r), (0, cols - c)))


# ---------------------------------------------------------------------------
# Parameter init (same semantics as before)
# ---------------------------------------------------------------------------
def _glorot(key, shape, scale=0.1):
    return (scale * jax.random.normal(key, shape)).astype(jnp.float32)


def init_comlayer(key, in_dim, hidden_dim, out_dim):
    k1, k2, k3 = jax.random.split(key, 3)
    return {
        "w1": _glorot(k1, (in_dim, hidden_dim)),
        "b1": jnp.zeros((hidden_dim,), jnp.float32),
        "w2": _glorot(k2, (hidden_dim, out_dim)),
        "b2": jnp.zeros((out_dim,), jnp.float32),
        "w_root": _glorot(k3, (in_dim, out_dim)),
    }


def init_ibgnn_params(key, in_feat, enc_dim, hidden_dim, out_dim, num_layers,
                      num_nodes, num_communities):
    keys = jax.random.split(key, 7)
    in_dims = [enc_dim] + [hidden_dim] * (num_layers - 1)
    hid_dims = [hidden_dim] * num_layers
    out_dims = [hidden_dim] * (num_layers - 1) + [out_dim]

    src_keys = jax.random.split(keys[0], num_layers)
    dst_keys = jax.random.split(keys[1], num_layers)
    return {
        "enc_w": _glorot(keys[2], (in_feat, enc_dim)),
        "enc_b": jnp.zeros((enc_dim,), jnp.float32),
        "src_layers": [init_comlayer(src_keys[i], i_d, h_d, o_d)
                       for i, (i_d, h_d, o_d)
                       in enumerate(zip(in_dims, hid_dims, out_dims))],
        "dst_layers": [init_comlayer(dst_keys[i], i_d, h_d, o_d)
                       for i, (i_d, h_d, o_d)
                       in enumerate(zip(in_dims, hid_dims, out_dims))],
        # IBG approximation matrices (frozen after ibg-approx training)
        "aff_src": jnp.abs(_glorot(keys[3], (num_nodes, num_communities), 1.0)),
        "inv_aff_src": _glorot(keys[4], (num_communities, num_nodes),
                               1.0 / num_nodes),
        "aff_dst": jnp.abs(_glorot(keys[5], (num_nodes, num_communities), 1.0)),
        "inv_aff_dst": _glorot(keys[6], (num_communities, num_nodes),
                               1.0 / num_nodes),
    }


# ---------------------------------------------------------------------------
# One-time prep: pad feature dims to 128 lanes, pack operands into slabs.
# ---------------------------------------------------------------------------
def prepare_padded_params(params, *, num_nodes, out_dim, num_layers,
                          compute_dtype=jnp.bfloat16,
                          out_dtype=jnp.float32):
    """Pads + packs all parameters into a handful of slabs.

    compute_dtype=jnp.bfloat16 (default) feeds the MXU at native rate on
    v6e/v7x and halves DMA bytes; accumulation stays f32 in-kernel.
    Use compute_dtype=jnp.float32 on v5e (no bf16 VPU) or for bit-exact
    parity with an f32 reference.  Padded entries are exactly zero.
    """
    enc_in, enc_dim = params["enc_w"].shape
    feat_dims = [enc_in, enc_dim, out_dim]
    for lyr in params["src_layers"] + params["dst_layers"]:
        feat_dims += [lyr["w1"].shape[0], lyr["w1"].shape[1],
                      lyr["w2"].shape[1]]
    fp = _round_up(max(feat_dims), LANE)
    n_pad = _round_up(num_nodes, SUBLANE)
    k = params["aff_src"].shape[1]
    k_pad = _round_up(k, SUBLANE)

    pad_w = lambda w: _pad2(w, fp, fp, compute_dtype)
    pad_b = lambda b: _pad2(b.reshape(1, -1), 1, fp, jnp.float32)

    # weight slab: [0]=enc_w, then per branch/per layer: w1, w2, w_root
    w_list = [pad_w(params["enc_w"])]
    # bias slab:   [0]=enc_b, then per branch/per layer: b1, b2
    b_list = [pad_b(params["enc_b"])]
    for branch in ("src_layers", "dst_layers"):
        for lyr in params[branch]:
            w_list += [pad_w(lyr["w1"]), pad_w(lyr["w2"]), pad_w(lyr["w_root"])]
            b_list += [pad_b(lyr["b1"]), pad_b(lyr["b2"])]
    w_slab = jnp.stack(w_list)                     # [1 + 6*L, fp, fp]
    b_slab = jnp.concatenate(b_list, axis=0)       # [1 + 4*L, fp]

    aff_slab = jnp.concatenate(                    # [2*n_pad, k_pad]
        [_pad2(params["aff_src"], n_pad, k_pad, compute_dtype),
         _pad2(params["aff_dst"], n_pad, k_pad, compute_dtype)], axis=0)
    inv_slab = jnp.concatenate(                    # [2*k_pad, n_pad]
        [_pad2(params["inv_aff_src"], k_pad, n_pad, compute_dtype),
         _pad2(params["inv_aff_dst"], k_pad, n_pad, compute_dtype)], axis=0)

    return {
        "feat_pad": fp,
        "n_pad": n_pad,
        "k_pad": k_pad,
        "out_dim": out_dim,
        "num_layers": num_layers,
        "compute_dtype": compute_dtype,
        "out_dtype": out_dtype,
        "w_slab": w_slab,
        "b_slab": b_slab,
        "aff_slab": aff_slab,
        "inv_slab": inv_slab,
    }


# ---------------------------------------------------------------------------
# Forward wrapper: one grid-less pallas_call for the whole model
# ---------------------------------------------------------------------------
def ibgnn_forward(pp, x):
    n, in_feat = x.shape
    fp, n_pad, k_pad = pp["feat_pad"], pp["n_pad"], pp["k_pad"]
    assert in_feat <= fp and n <= n_pad

    x_p = _pad2(x, n_pad, fp, pp["compute_dtype"])
    operands = (x_p, pp["w_slab"], pp["b_slab"], pp["aff_slab"],
                pp["inv_slab"])

    # Explicit scoped-VMEM budget sized from the actual operands
    # (defaults are 16/32 MiB; 64 MiB cap keeps it valid on v7x).
    out_bytes = n_pad * fp * jnp.dtype(pp["out_dtype"]).itemsize
    in_bytes = sum(int(a.size) * a.dtype.itemsize for a in operands)
    vmem_limit = min(2 * (in_bytes + out_bytes) + (8 << 20), 64 << 20)

    vmem = pltpu.MemorySpace.VMEM
    out = pl.pallas_call(
        functools.partial(_fused_ibgnn_kernel, num_layers=pp["num_layers"],
                          n_pad=n_pad, k_pad=k_pad),
        out_shape=jax.ShapeDtypeStruct((n_pad, fp), pp["out_dtype"]),
        in_specs=[pl.BlockSpec(memory_space=vmem) for _ in operands],
        out_specs=pl.BlockSpec(memory_space=vmem),
        compiler_params=pltpu.CompilerParams(vmem_limit_bytes=int(vmem_limit)),
    )(*operands)
    return out[:n, :pp["out_dim"]]


# ---------------------------------------------------------------------------
# Pure-JAX reference (unpadded, f32) for correctness checking
# ---------------------------------------------------------------------------
def ibgnn_reference(params, x):
    x_enc = x @ params["enc_w"] + params["enc_b"]

    def branch(layers, aff, inv_aff):
        h = x_enc
        n_l = len(layers)
        for li, l in enumerate(layers):
            feat = inv_aff @ h
            hid = jax.nn.relu(feat @ l["w1"] + l["b1"])
            com = hid @ l["w2"] + l["b2"]
            h = h @ l["w_root"] + aff @ com
            if li < n_l - 1:
                h = jax.nn.relu(h)
        return h

    out_src = branch(params["src_layers"], params["aff_src"],
                     params["inv_aff_src"])
    out_dst = branch(params["dst_layers"], params["aff_dst"],
                     params["inv_aff_dst"])
    return (out_src + out_dst) * 0.5


# ---------------------------------------------------------------------------
if __name__ == "__main__":
    key = jax.random.PRNGKey(0)
    k_x, k_p = jax.random.split(key)

    N = 128            # nodes
    K = 8              # communities
    IN_FEAT = 16       # raw input features
    ENC_DIM = 16       # encoded_dim
    HIDDEN = 32        # hidden_dim
    OUT_DIM = 8        # out_dim
    NUM_LAYERS = 2

    x = jax.random.normal(k_x, (N, IN_FEAT), dtype=jnp.float32)
    params = init_ibgnn_params(k_p, IN_FEAT, ENC_DIM, HIDDEN, OUT_DIM,
                               NUM_LAYERS, N, K)
    ref = ibgnn_reference(params, x)

    # 1) f32 compute path (v5e-style): proves the padding/packing is exact.
    pp_f32 = prepare_padded_params(params, num_nodes=N, out_dim=OUT_DIM,
                                   num_layers=NUM_LAYERS,
                                   compute_dtype=jnp.float32)
    out_f32 = ibgnn_forward(pp_f32, x)
    jax.block_until_ready(out_f32)
    assert out_f32.shape == (N, OUT_DIM) and out_f32.dtype == jnp.float32
    assert jnp.allclose(out_f32, ref, atol=1e-3, rtol=1e-3), \
        float(jnp.max(jnp.abs(out_f32 - ref)))

    # 2) default bf16 MXU path (recommended on v6e/v7x): bf16-level tolerance.
    pp_bf16 = prepare_padded_params(params, num_nodes=N, out_dim=OUT_DIM,
                                    num_layers=NUM_LAYERS)
    out_bf16 = ibgnn_forward(pp_bf16, x)
    jax.block_until_ready(out_bf16)
    assert out_bf16.shape == (N, OUT_DIM)
    assert jnp.allclose(out_bf16, ref, atol=5e-2, rtol=5e-2), \
        float(jnp.max(jnp.abs(out_bf16 - ref)))

    print("KERNEL_OK")
</pallas_src>

<mosaic_0001>
module attributes {stable_mosaic.version = 11 : i64} {
  func.func @_fused_ibgnn_kernel(%arg0: memref<128x128xf32, #tpu.memory_space<vmem>>, %arg1: memref<13x128x128xf32, #tpu.memory_space<vmem>>, %arg2: memref<9x128xf32, #tpu.memory_space<vmem>>, %arg3: memref<256x8xf32, #tpu.memory_space<vmem>>, %arg4: memref<16x128xf32, #tpu.memory_space<vmem>>, %arg5: memref<128x128xf32, #tpu.memory_space<vmem>>) attributes {dimension_semantics = [], scalar_prefetch = 0 : i64, scratch_operands = 0 : i64, tpu.core_type = #tpu.core_type<tc>} {
    %c0 = arith.constant 0 : index
    %c0_0 = arith.constant 0 : index
    %0 = vector.load %arg0[%c0, %c0_0] : memref<128x128xf32, #tpu.memory_space<vmem>>, vector<128x128xf32>
    %c0_1 = arith.constant 0 : index
    %c0_2 = arith.constant 0 : index
    %c0_3 = arith.constant 0 : index
    %1 = vector.load %arg1[%c0_1, %c0_2, %c0_3] : memref<13x128x128xf32, #tpu.memory_space<vmem>>, vector<1x128x128xf32>
    %2 = vector.shape_cast %1 : vector<1x128x128xf32> to vector<128x128xf32>
    %cst = arith.constant dense<0.000000e+00> : vector<128x128xf32>
    %3 = tpu.matmul %0, %2, %cst {dimension_numbers = #tpu.dot_dimension_numbers<[1], [0], [0], [1], [0, 0, 1, 1], [], []>} : vector<128x128xf32>, vector<128x128xf32>, vector<128x128xf32> -> vector<128x128xf32>
    %c0_4 = arith.constant 0 : index
    %c0_5 = arith.constant 0 : index
    %4 = vector.load %arg2[%c0_4, %c0_5] : memref<9x128xf32, #tpu.memory_space<vmem>>, vector<1x128xf32>
    %5 = vector.broadcast %4 : vector<1x128xf32> to vector<128x128xf32>
    %6 = arith.addf %3, %5 : vector<128x128xf32>
    %c0_6 = arith.constant 0 : index
    %c0_7 = arith.constant 0 : index
    %7 = vector.load %arg4[%c0_6, %c0_7] : memref<16x128xf32, #tpu.memory_space<vmem>>, vector<16x128xf32>
    %cst_8 = arith.constant dense<0.000000e+00> : vector<16x128xf32>
    %8 = tpu.matmul %7, %6, %cst_8 {dimension_numbers = #tpu.dot_dimension_numbers<[1], [0], [0], [1], [0, 0, 1, 1], [], []>} : vector<16x128xf32>, vector<128x128xf32>, vector<16x128xf32> -> vector<16x128xf32>
    %c0_9 = arith.constant 0 : index
    %c0_10 = arith.constant 0 : index
    %9 = vector.load %arg3[%c0_9, %c0_10] : memref<256x8xf32, #tpu.memory_space<vmem>>, vector<128x8xf32>
    %10 = vector.extract_strided_slice %8 {offsets = [0, 0], sizes = [8, 128], strides = [1, 1]} : vector<16x128xf32> to vector<8x128xf32>
    %c1 = arith.constant 1 : index
    %c0_11 = arith.constant 0 : index
    %c0_12 = arith.constant 0 : index
    %11 = vector.load %arg1[%c1, %c0_11, %c0_12] : memref<13x128x128xf32, #tpu.memory_space<vmem>>, vector<1x128x128xf32>
    %12 = vector.shape_cast %11 : vector<1x128x128xf32> to vector<128x128xf32>
    %cst_13 = arith.constant dense<0.000000e+00> : vector<8x128xf32>
    %13 = tpu.matmul %10, %12, %cst_13 {dimension_numbers = #tpu.dot_dimension_numbers<[1], [0], [0], [1], [0, 0, 1, 1], [], []>} : vector<8x128xf32>, vector<128x128xf32>, vector<8x128xf32> -> vector<8x128xf32>
    %c1_14 = arith.constant 1 : index
    %c0_15 = arith.constant 0 : index
    %14 = vector.load %arg2[%c1_14, %c0_15] : memref<9x128xf32, #tpu.memory_space<vmem>>, vector<1x128xf32>
    %15 = vector.broadcast %14 : vector<1x128xf32> to vector<8x128xf32>
    %16 = arith.addf %13, %15 : vector<8x128xf32>
    %cst_16 = arith.constant 0.000000e+00 : f32
    %17 = vector.broadcast %cst_16 : f32 to vector<8x128xf32>
    %18 = arith.maximumf %16, %17 : vector<8x128xf32>
    %c2 = arith.constant 2 : index
    %c0_17 = arith.constant 0 : index
    %c0_18 = arith.constant 0 : index
    %19 = vector.load %arg1[%c2, %c0_17, %c0_18] : memref<13x128x128xf32, #tpu.memory_space<vmem>>, vector<1x128x128xf32>
    %20 = vector.shape_cast %19 : vector<1x128x128xf32> to vector<128x128xf32>
    %cst_19 = arith.constant dense<0.000000e+00> : vector<8x128xf32>
    %21 = tpu.matmul %18, %20, %cst_19 {dimension_numbers = #tpu.dot_dimension_numbers<[1], [0], [0], [1], [0, 0, 1, 1], [], []>} : vector<8x128xf32>, vector<128x128xf32>, vector<8x128xf32> -> vector<8x128xf32>
    %c2_20 = arith.constant 2 : index
    %c0_21 = arith.constant 0 : index
    %22 = vector.load %arg2[%c2_20, %c0_21] : memref<9x128xf32, #tpu.memory_space<vmem>>, vector<1x128xf32>
    %23 = vector.broadcast %22 : vector<1x128xf32> to vector<8x128xf32>
    %24 = arith.addf %21, %23 : vector<8x128xf32>
    %c3 = arith.constant 3 : index
    %c0_22 = arith.constant 0 : index
    %c0_23 = arith.constant 0 : index
    %25 = vector.load %arg1[%c3, %c0_22, %c0_23] : memref<13x128x128xf32, #tpu.memory_space<vmem>>, vector<1x128x128xf32>
    %26 = vector.shape_cast %25 : vector<1x128x128xf32> to vector<128x128xf32>
    %cst_24 = arith.constant dense<0.000000e+00> : vector<128x128xf32>
    %27 = tpu.matmul %6, %26, %cst_24 {dimension_numbers = #tpu.dot_dimension_numbers<[1], [0], [0], [1], [0, 0, 1, 1], [], []>} : vector<128x128xf32>, vector<128x128xf32>, vector<128x128xf32> -> vector<128x128xf32>
    %cst_25 = arith.constant dense<0.000000e+00> : vector<128x128xf32>
    %28 = tpu.matmul %9, %24, %cst_25 {dimension_numbers = #tpu.dot_dimension_numbers<[1], [0], [0], [1], [0, 0, 1, 1], [], []>} : vector<128x8xf32>, vector<8x128xf32>, vector<128x128xf32> -> vector<128x128xf32>
    %29 = arith.addf %27, %28 : vector<128x128xf32>
    %cst_26 = arith.constant 0.000000e+00 : f32
    %30 = vector.broadcast %cst_26 : f32 to vector<128x128xf32>
    %31 = arith.maximumf %29, %30 : vector<128x128xf32>
    %c0_27 = arith.constant 0 : index
    %c0_28 = arith.constant 0 : index
    %32 = vector.load %arg4[%c0_27, %c0_28] : memref<16x128xf32, #tpu.memory_space<vmem>>, vector<8x128xf32>
    %cst_29 = arith.constant dense<0.000000e+00> : vector<8x128xf32>
    %33 = tpu.matmul %32, %31, %cst_29 {dimension_numbers = #tpu.dot_dimension_numbers<[1], [0], [0], [1], [0, 0, 1, 1], [], []>} : vector<8x128xf32>, vector<128x128xf32>, vector<8x128xf32> -> vector<8x128xf32>
    %c4 = arith.constant 4 : index
    %c0_30 = arith.constant 0 : index
    %c0_31 = arith.constant 0 : index
    %34 = vector.load %arg1[%c4, %c0_30, %c0_31] : memref<13x128x128xf32, #tpu.memory_space<vmem>>, vector<1x128x128xf32>
    %35 = vector.shape_cast %34 : vector<1x128x128xf32> to vector<128x128xf32>
    %cst_32 = arith.constant dense<0.000000e+00> : vector<8x128xf32>
    %36 = tpu.matmul %33, %35, %cst_32 {dimension_numbers = #tpu.dot_dimension_numbers<[1], [0], [0], [1], [0, 0, 1, 1], [], []>} : vector<8x128xf32>, vector<128x128xf32>, vector<8x128xf32> -> vector<8x128xf32>
    %c3_33 = arith.constant 3 : index
    %c0_34 = arith.constant 0 : index
    %37 = vector.load %arg2[%c3_33, %c0_34] : memref<9x128xf32, #tpu.memory_space<vmem>>, vector<1x128xf32>
    %38 = vector.broadcast %37 : vector<1x128xf32> to vector<8x128xf32>
    %39 = arith.addf %36, %38 : vector<8x128xf32>
    %cst_35 = arith.constant 0.000000e+00 : f32
    %40 = vector.broadcast %cst_35 : f32 to vector<8x128xf32>
    %41 = arith.maximumf %39, %40 : vector<8x128xf32>
    %c5 = arith.constant 5 : index
    %c0_36 = arith.constant 0 : index
    %c0_37 = arith.constant 0 : index
    %42 = vector.load %arg1[%c5, %c0_36, %c0_37] : memref<13x128x128xf32, #tpu.memory_space<vmem>>, vector<1x128x128xf32>
    %43 = vector.shape_cast %42 : vector<1x128x128xf32> to vector<128x128xf32>
    %cst_38 = arith.constant dense<0.000000e+00> : vector<8x128xf32>
    %44 = tpu.matmul %41, %43, %cst_38 {dimension_numbers = #tpu.dot_dimension_numbers<[1], [0], [0], [1], [0, 0, 1, 1], [], []>} : vector<8x128xf32>, vector<128x128xf32>, vector<8x128xf32> -> vector<8x128xf32>
    %c4_39 = arith.constant 4 : index
    %c0_40 = arith.constant 0 : index
    %45 = vector.load %arg2[%c4_39, %c0_40] : memref<9x128xf32, #tpu.memory_space<vmem>>, vector<1x128xf32>
    %46 = vector.broadcast %45 : vector<1x128xf32> to vector<8x128xf32>
    %47 = arith.addf %44, %46 : vector<8x128xf32>
    %c6 = arith.constant 6 : index
    %c0_41 = arith.constant 0 : index
    %c0_42 = arith.constant 0 : index
    %48 = vector.load %arg1[%c6, %c0_41, %c0_42] : memref<13x128x128xf32, #tpu.memory_space<vmem>>, vector<1x128x128xf32>
    %49 = vector.shape_cast %48 : vector<1x128x128xf32> to vector<128x128xf32>
    %cst_43 = arith.constant dense<0.000000e+00> : vector<128x128xf32>
    %50 = tpu.matmul %31, %49, %cst_43 {dimension_numbers = #tpu.dot_dimension_numbers<[1], [0], [0], [1], [0, 0, 1, 1], [], []>} : vector<128x128xf32>, vector<128x128xf32>, vector<128x128xf32> -> vector<128x128xf32>
    %cst_44 = arith.constant dense<0.000000e+00> : vector<128x128xf32>
    %51 = tpu.matmul %9, %47, %cst_44 {dimension_numbers = #tpu.dot_dimension_numbers<[1], [0], [0], [1], [0, 0, 1, 1], [], []>} : vector<128x8xf32>, vector<8x128xf32>, vector<128x128xf32> -> vector<128x128xf32>
    %52 = arith.addf %50, %51 : vector<128x128xf32>
    %c128 = arith.constant 128 : index
    %c0_45 = arith.constant 0 : index
    %53 = vector.load %arg3[%c128, %c0_45] : memref<256x8xf32, #tpu.memory_space<vmem>>, vector<128x8xf32>
    %54 = vector.extract_strided_slice %8 {offsets = [8, 0], sizes = [8, 128], strides = [1, 1]} : vector<16x128xf32> to vector<8x128xf32>
    %c7 = arith.constant 7 : index
    %c0_46 = arith.constant 0 : index
    %c0_47 = arith.constant 0 : index
    %55 = vector.load %arg1[%c7, %c0_46, %c0_47] : memref<13x128x128xf32, #tpu.memory_space<vmem>>, vector<1x128x128xf32>
    %56 = vector.shape_cast %55 : vector<1x128x128xf32> to vector<128x128xf32>
    %cst_48 = arith.constant dense<0.000000e+00> : vector<8x128xf32>
    %57 = tpu.matmul %54, %56, %cst_48 {dimension_numbers = #tpu.dot_dimension_numbers<[1], [0], [0], [1], [0, 0, 1, 1], [], []>} : vector<8x128xf32>, vector<128x128xf32>, vector<8x128xf32> -> vector<8x128xf32>
    %c5_49 = arith.constant 5 : index
    %c0_50 = arith.constant 0 : index
    %58 = vector.load %arg2[%c5_49, %c0_50] : memref<9x128xf32, #tpu.memory_space<vmem>>, vector<1x128xf32>
    %59 = vector.broadcast %58 : vector<1x128xf32> to vector<8x128xf32>
    %60 = arith.addf %57, %59 : vector<8x128xf32>
    %cst_51 = arith.constant 0.000000e+00 : f32
    %61 = vector.broadcast %cst_51 : f32 to vector<8x128xf32>
    %62 = arith.maximumf %60, %61 : vector<8x128xf32>
    %c8 = arith.constant 8 : index
    %c0_52 = arith.constant 0 : index
    %c0_53 = arith.constant 0 : index
    %63 = vector.load %arg1[%c8, %c0_52, %c0_53] : memref<13x128x128xf32, #tpu.memory_space<vmem>>, vector<1x128x128xf32>
    %64 = vector.shape_cast %63 : vector<1x128x128xf32> to vector<128x128xf32>
    %cst_54 = arith.constant dense<0.000000e+00> : vector<8x128xf32>
    %65 = tpu.matmul %62, %64, %cst_54 {dimension_numbers = #tpu.dot_dimension_numbers<[1], [0], [0], [1], [0, 0, 1, 1], [], []>} : vector<8x128xf32>, vector<128x128xf32>, vector<8x128xf32> -> vector<8x128xf32>
    %c6_55 = arith.constant 6 : index
    %c0_56 = arith.constant 0 : index
    %66 = vector.load %arg2[%c6_55, %c0_56] : memref<9x128xf32, #tpu.memory_space<vmem>>, vector<1x128xf32>
    %67 = vector.broadcast %66 : vector<1x128xf32> to vector<8x128xf32>
    %68 = arith.addf %65, %67 : vector<8x128xf32>
    %c9 = arith.constant 9 : index
    %c0_57 = arith.constant 0 : index
    %c0_58 = arith.constant 0 : index
    %69 = vector.load %arg1[%c9, %c0_57, %c0_58] : memref<13x128x128xf32, #tpu.memory_space<vmem>>, vector<1x128x128xf32>
    %70 = vector.shape_cast %69 : vector<1x128x128xf32> to vector<128x128xf32>
    %cst_59 = arith.constant dense<0.000000e+00> : vector<128x128xf32>
    %71 = tpu.matmul %6, %70, %cst_59 {dimension_numbers = #tpu.dot_dimension_numbers<[1], [0], [0], [1], [0, 0, 1, 1], [], []>} : vector<128x128xf32>, vector<128x128xf32>, vector<128x128xf32> -> vector<128x128xf32>
    %cst_60 = arith.constant dense<0.000000e+00> : vector<128x128xf32>
    %72 = tpu.matmul %53, %68, %cst_60 {dimension_numbers = #tpu.dot_dimension_numbers<[1], [0], [0], [1], [0, 0, 1, 1], [], []>} : vector<128x8xf32>, vector<8x128xf32>, vector<128x128xf32> -> vector<128x128xf32>
    %73 = arith.addf %71, %72 : vector<128x128xf32>
    %cst_61 = arith.constant 0.000000e+00 : f32
    %74 = vector.broadcast %cst_61 : f32 to vector<128x128xf32>
    %75 = arith.maximumf %73, %74 : vector<128x128xf32>
    %c8_62 = arith.constant 8 : index
    %c0_63 = arith.constant 0 : index
    %76 = vector.load %arg4[%c8_62, %c0_63] : memref<16x128xf32, #tpu.memory_space<vmem>>, vector<8x128xf32>
    %cst_64 = arith.constant dense<0.000000e+00> : vector<8x128xf32>
    %77 = tpu.matmul %76, %75, %cst_64 {dimension_numbers = #tpu.dot_dimension_numbers<[1], [0], [0], [1], [0, 0, 1, 1], [], []>} : vector<8x128xf32>, vector<128x128xf32>, vector<8x128xf32> -> vector<8x128xf32>
    %c10 = arith.constant 10 : index
    %c0_65 = arith.constant 0 : index
    %c0_66 = arith.constant 0 : index
    %78 = vector.load %arg1[%c10, %c0_65, %c0_66] : memref<13x128x128xf32, #tpu.memory_space<vmem>>, vector<1x128x128xf32>
    %79 = vector.shape_cast %78 : vector<1x128x128xf32> to vector<128x128xf32>
    %cst_67 = arith.constant dense<0.000000e+00> : vector<8x128xf32>
    %80 = tpu.matmul %77, %79, %cst_67 {dimension_numbers = #tpu.dot_dimension_numbers<[1], [0], [0], [1], [0, 0, 1, 1], [], []>} : vector<8x128xf32>, vector<128x128xf32>, vector<8x128xf32> -> vector<8x128xf32>
    %c7_68 = arith.constant 7 : index
    %c0_69 = arith.constant 0 : index
    %81 = vector.load %arg2[%c7_68, %c0_69] : memref<9x128xf32, #tpu.memory_space<vmem>>, vector<1x128xf32>
    %82 = vector.broadcast %81 : vector<1x128xf32> to vector<8x128xf32>
    %83 = arith.addf %80, %82 : vector<8x128xf32>
    %cst_70 = arith.constant 0.000000e+00 : f32
    %84 = vector.broadcast %cst_70 : f32 to vector<8x128xf32>
    %85 = arith.maximumf %83, %84 : vector<8x128xf32>
    %c11 = arith.constant 11 : index
    %c0_71 = arith.constant 0 : index
    %c0_72 = arith.constant 0 : index
    %86 = vector.load %arg1[%c11, %c0_71, %c0_72] : memref<13x128x128xf32, #tpu.memory_space<vmem>>, vector<1x128x128xf32>
    %87 = vector.shape_cast %86 : vector<1x128x128xf32> to vector<128x128xf32>
    %cst_73 = arith.constant dense<0.000000e+00> : vector<8x128xf32>
    %88 = tpu.matmul %85, %87, %cst_73 {dimension_numbers = #tpu.dot_dimension_numbers<[1], [0], [0], [1], [0, 0, 1, 1], [], []>} : vector<8x128xf32>, vector<128x128xf32>, vector<8x128xf32> -> vector<8x128xf32>
    %c8_74 = arith.constant 8 : index
    %c0_75 = arith.constant 0 : index
    %89 = vector.load %arg2[%c8_74, %c0_75] : memref<9x128xf32, #tpu.memory_space<vmem>>, vector<1x128xf32>
    %90 = vector.broadcast %89 : vector<1x128xf32> to vector<8x128xf32>
    %91 = arith.addf %88, %90 : vector<8x128xf32>
    %c12 = arith.constant 12 : index
    %c0_76 = arith.constant 0 : index
    %c0_77 = arith.constant 0 : index
    %92 = vector.load %arg1[%c12, %c0_76, %c0_77] : memref<13x128x128xf32, #tpu.memory_space<vmem>>, vector<1x128x128xf32>
    %93 = vector.shape_cast %92 : vector<1x128x128xf32> to vector<128x128xf32>
    %cst_78 = arith.constant dense<0.000000e+00> : vector<128x128xf32>
    %94 = tpu.matmul %75, %93, %cst_78 {dimension_numbers = #tpu.dot_dimension_numbers<[1], [0], [0], [1], [0, 0, 1, 1], [], []>} : vector<128x128xf32>, vector<128x128xf32>, vector<128x128xf32> -> vector<128x128xf32>
    %cst_79 = arith.constant dense<0.000000e+00> : vector<128x128xf32>
    %95 = tpu.matmul %53, %91, %cst_79 {dimension_numbers = #tpu.dot_dimension_numbers<[1], [0], [0], [1], [0, 0, 1, 1], [], []>} : vector<128x8xf32>, vector<8x128xf32>, vector<128x128xf32> -> vector<128x128xf32>
    %96 = arith.addf %94, %95 : vector<128x128xf32>
    %97 = arith.addf %52, %96 : vector<128x128xf32>
    %cst_80 = arith.constant 5.000000e-01 : f32
    %98 = vector.broadcast %cst_80 : f32 to vector<128x128xf32>
    %99 = arith.mulf %97, %98 : vector<128x128xf32>
    %c0_81 = arith.constant 0 : index
    %c0_82 = arith.constant 0 : index
    %100 = vector.load %arg5[%c0_81, %c0_82] : memref<128x128xf32, #tpu.memory_space<vmem>>, vector<128x128xf32>
    tpu.vector_store %arg5[%c0_81, %c0_82], %99 {strides = array<i32>} : memref<128x128xf32, #tpu.memory_space<vmem>>, vector<128x128xf32>,
    return
  }
}

</mosaic_0001>

<bundles_post_ra>
// kernel: tpu_custom_call.1
= control target key start
LH: loop header
LB: loop body
LE: loop exit
PB: predicated region body
PF: predicated region fallthrough
CT: control target
= control target key end

     0   :  { %10 = vsyncpa [#allocation3], 0  ;;  %s2246_s0 = inlined_call_operand.vmem [shape: f32[128,128], index: 0, kind: input, shape index: {}]   ;;  %s2247_s1 = inlined_call_operand.hbm [shape: f32[13,128,128], index: 1, kind: input, shape index: {}]   ;;  %s2248_s2 = inlined_call_operand.vmem [shape: f32[9,128], index: 2, kind: input, shape index: {}]   ;;  %s2249_s3 = inlined_call_operand.vmem [shape: f32[256,8], index: 3, kind: input, shape index: {}]   ;;  %s2250_s4 = inlined_call_operand.vmem [shape: f32[16,128], index: 4, kind: input, shape index: {}]   ;;  %s2251_s5 = inlined_call_operand.hbm [shape: f32[128,128], index: 5, kind: output, shape index: {}]  }
   0x1   :  { %11 = vsyncpa [#allocation4], 0  ;;  %s18_s20 = sshll.u32 %s2247_s1, 4  ;;  %s1483_s21 = smov [#allocation2]   ;;  %s19_s20 = int_to_ptr.hbm [resolvable:$true] %s18_s20 }
   0x2   :  { %s20_s22 = sshll.u32 %s1483_s21, 4  ;;  %s1484_s23 = smov 128   ;;  %s21_s22 = int_to_ptr.vmem [resolvable:$true] %s20_s22 }
   0x3   :  { %s1485_s24 = smov 8  }
   0x4   :  { %26 = dma.hbm_to_vmem [thread:$0]  %s19_s20, 26624, %s21_s22, [#allocation3], %s1484_s23, %s1484_s23, %s1485_s24  }
   0x5   :  { %1479 = dma.done.wait [#allocation3], 26624  }
   0x6   :  { %1480 = vsyncadd [#allocation3], 4294940672  ;;  %v68_v0 = vld [vmem:[#allocation2 + $0x78] sm:$0xff]  ;;  %v67_v1 = vld [vmem:[#allocation2 + $0x70] sm:$0xff]  ;;  %vm273_vm0 = vcmask 64512   ;;  %s1321_s25 = sshll.u32 %s2251_s5, 4  ;;  %s1322_s25 = int_to_ptr.hbm [resolvable:$true] %s1321_s25 }
   0x7   :  { %71 = vmatpush.msra.mxu0 %v68_v0  ;;  %1398 = vmatpush.msra.mxu2 %v68_v0  ;;  %v66_v2 = vld [vmem:[#allocation2 + $0x68] sm:$0xff]  ;;  %v65_v3 = vld [vmem:[#allocation2 + $0x60] sm:$0xff]  ;;  %v64_v4 = vld [vmem:[#allocation2 + $0x58] sm:$0xff] }
   0x8   :  { %v63_v5 = vld [vmem:[#allocation2 + $0x50] sm:$0xff]  ;;  %v62_v6 = vld [vmem:[#allocation2 + $0x48] sm:$0xff]  ;;  %v61_v7 = vld [vmem:[#allocation2 + $0x40] sm:$0xff] }
   0x9   :  { %72 = vmatpush.msra.mxu0 %v67_v1  ;;  %1399 = vmatpush.msra.mxu2 %v67_v1  ;;  %v60_v8 = vld [vmem:[#allocation2 + $0x38] sm:$0xff]  ;;  %v59_v9 = vld [vmem:[#allocation2 + $0x30] sm:$0xff]  ;;  %v58_v10 = vld [vmem:[#allocation2 + $0x28] sm:$0xff] }
   0xa   :  { %v57_v11 = vld [vmem:[#allocation2 + $0x20] sm:$0xff]  ;;  %v56_v12 = vld [vmem:[#allocation2 + $0x18] sm:$0xff]  ;;  %v55_v13 = vld [vmem:[#allocation2 + $0x10] sm:$0xff] }
   0xb   :  { %73 = vmatpush.msra.mxu0 %v66_v2  ;;  %1400 = vmatpush.msra.mxu2 %v66_v2  ;;  %v54_v14 = vld [vmem:[#allocation2 + $0x8] sm:$0xff]  ;;  %v53_v15 = vld [vmem:[#allocation2] sm:$0xff]  ;;  %v47_v17 = vld [vmem:[%s2246_s0 + $0x50] sm:$0xff] }
   0xc   :  { %v37_v16 = vld [vmem:[%s2246_s0] sm:$0xff]  ;;  %v38_v18 = vld [vmem:[%s2246_s0 + $0x8] sm:$0xff]  ;;  %v48_v19 = vld [vmem:[%s2246_s0 + $0x58] sm:$0xff] }
   0xd   :  { %74 = vmatpush.msra.mxu0 %v65_v3  ;;  %1401 = vmatpush.msra.mxu2 %v65_v3  ;;  %v39_v20 = vld [vmem:[%s2246_s0 + $0x10] sm:$0xff]  ;;  %v49_v21 = vld [vmem:[%s2246_s0 + $0x60] sm:$0xff]  ;;  %v40_v22 = vld [vmem:[%s2246_s0 + $0x18] sm:$0xff] }
   0xe   :  { %v50_v23 = vld [vmem:[%s2246_s0 + $0x68] sm:$0xff]  ;;  %v41_v24 = vld [vmem:[%s2246_s0 + $0x20] sm:$0xff]  ;;  %v51_v25 = vld [vmem:[%s2246_s0 + $0x70] sm:$0xff] }
   0xf   :  { %75 = vmatpush.msra.mxu0 %v64_v4  ;;  %1402 = vmatpush.msra.mxu2 %v64_v4  ;;  %v42_v26 = vld [vmem:[%s2246_s0 + $0x28] sm:$0xff]  ;;  %v52_v27 = vld [vmem:[%s2246_s0 + $0x78] sm:$0xff]  ;;  %v43_v28 = vld [vmem:[%s2246_s0 + $0x30] sm:$0xff] }
  0x10   :  { %v44_v29 = vld [vmem:[%s2246_s0 + $0x38] sm:$0xff]  ;;  %v45_v30 = vld [vmem:[%s2246_s0 + $0x40] sm:$0xff]  ;;  %v46_v31 = vld [vmem:[%s2246_s0 + $0x48] sm:$0xff] }
  0x11   :  { %76 = vmatpush.msra.mxu0 %v63_v5  ;;  %1403 = vmatpush.msra.mxu2 %v63_v5  ;;  %v1580_v43 = vld [vmem:[%s2248_s2] ss:$0 sm:$0xff]  ;;  %v193_v53 = vld [vmem:[#allocation2 + $0xf8] sm:$0xff]  ;;  %v192_v54 = vld [vmem:[#allocation2 + $0xf0] sm:$0xff] }
  0x12   :  { %v191_v56 = vld [vmem:[#allocation2 + $0xe8] sm:$0xff]  ;;  %v190_v57 = vld [vmem:[#allocation2 + $0xe0] sm:$0xff]  ;;  %v189_v58 = vld [vmem:[#allocation2 + $0xd8] sm:$0xff] }
  0x13   :  { %77 = vmatpush.msra.mxu0 %v62_v6  ;;  %1404 = vmatpush.msra.mxu2 %v62_v6  ;;  %v188_v59 = vld [vmem:[#allocation2 + $0xd0] sm:$0xff]  ;;  %v187_v61 = vld [vmem:[#allocation2 + $0xc8] sm:$0xff]  ;;  %v186_v63 = vld [vmem:[#allocation2 + $0xc0] sm:$0xff] }
  0x14   :  { %v185_v1 = vld [vmem:[#allocation2 + $0xb8] sm:$0xff]  ;;  %v184_v3 = vld [vmem:[#allocation2 + $0xb0] sm:$0xff]  ;;  %v183_v5 = vld [vmem:[#allocation2 + $0xa8] sm:$0xff] }
  0x15   :  { %78 = vmatpush.msra.mxu0 %v61_v7  ;;  %1405 = vmatpush.msra.mxu2 %v61_v7  ;;  %v182_v7 = vld [vmem:[#allocation2 + $0xa0] sm:$0xff] }
  0x17   :  { %79 = vmatpush.msra.mxu0 %v60_v8  ;;  %1406 = vmatpush.msra.mxu2 %v60_v8 }
  0x19   :  { %80 = vmatpush.msra.mxu0 %v59_v9  ;;  %1407 = vmatpush.msra.mxu2 %v59_v9  ;;  %v181_v9 = vld [vmem:[#allocation2 + $0x98] sm:$0xff] }
  0x1b   :  { %81 = vmatpush.msra.mxu0 %v58_v10  ;;  %1408 = vmatpush.msra.mxu2 %v58_v10 }
  0x1d   :  { %82 = vmatpush.msra.mxu0 %v57_v11  ;;  %1409 = vmatpush.msra.mxu2 %v57_v11  ;;  %v180_v11 = vld [vmem:[#allocation2 + $0x90] sm:$0xff] }
  0x1f   :  { %83 = vmatpush.msra.mxu0 %v56_v12  ;;  %1410 = vmatpush.msra.mxu2 %v56_v12 }
  0x21   :  { %84 = vmatpush.msra.mxu0 %v55_v13  ;;  %1411 = vmatpush.msra.mxu2 %v55_v13  ;;  %v179_v13 = vld [vmem:[#allocation2 + $0x88] sm:$0xff] }
  0x23   :  { %85 = vmatpush.msra.mxu0 %v54_v14  ;;  %1412 = vmatpush.msra.mxu2 %v54_v14 }
  0x25   :  { %86 = vmatpush.msra.mxu0 %v53_v15  ;;  %1413 = vmatpush.msra.mxu2 %v53_v15 }
  0x26   :  { %87 = vmatmul.f32.vlgmr.msra.gmra.mxu0 %v37_v16  ;;  %117 = vmatmul.f32.vlgmr.msra.gmra.mxu2 %v47_v17  ;;  %v1651_v16 = vld [vmem:[%s2250_s4] sm:$0xff] }
  0x27   :  { %196 = vmatpush.msrb.mxu2 %v193_v53  ;;  %v178_v17 = vld [vmem:[#allocation2 + $0x80] sm:$0xff] }
  0x28   :  { %v740_v53 = vld [vmem:[#allocation2 + $0x3c0] sm:$0xff] }
  0x29   :  { %197 = vmatpush.msrb.mxu2 %v192_v54  ;;  %v739_v54 = vld [vmem:[#allocation2 + $0x3b8] sm:$0xff] }
  0x2b   :  { %198 = vmatpush.msrb.mxu2 %v191_v56  ;;  %v737_v56 = vld [vmem:[#allocation2 + $0x3a8] sm:$0xff] }
  0x2d   :  { %199 = vmatpush.msrb.mxu2 %v190_v57  ;;  %v736_v57 = vld [vmem:[#allocation2 + $0x3a0] sm:$0xff] }
  0x2e   :  { %90 = vmatmul.f32.gmra.mxu0 %v38_v18  ;;  %120 = vmatmul.f32.gmra.mxu2 %v48_v19  ;;  %v233_v18 = vld [vmem:[#allocation2 + $0x178] sm:$0xff]  ;;  %v232_v19 = vld [vmem:[#allocation2 + $0x170] sm:$0xff] }
  0x2f   :  { %200 = vmatpush.msrb.mxu2 %v189_v58  ;;  %236 = vmatpush.msra.mxu3 %v233_v18  ;;  %v735_v58 = vld [vmem:[#allocation2 + $0x398] sm:$0xff]  ;;  %v162_v18 = vld [vmem:[%s2249_s3 + $0x8] sm:$0xff] }
  0x31   :  { %201 = vmatpush.msrb.mxu2 %v188_v59  ;;  %237 = vmatpush.msra.mxu3 %v232_v19  ;;  %v734_v59 = vld [vmem:[#allocation2 + $0x390] sm:$0xff]  ;;  %v268_v19 = vld [vmem:[#allocation2 + $0x1d8] sm:$0xff] }
  0x33   :  { %202 = vmatpush.msrb.mxu2 %v187_v61 }
  0x35   :  { %203 = vmatpush.msrb.mxu2 %v186_v63  ;;  %v732_v63 = vld [vmem:[#allocation2 + $0x380] sm:$0xff] }
  0x36   :  { %93 = vmatmul.f32.gmra.mxu0 %v39_v20  ;;  %123 = vmatmul.f32.gmra.mxu2 %v49_v21  ;;  %v231_v20 = vld [vmem:[#allocation2 + $0x168] sm:$0xff]  ;;  %v230_v21 = vld [vmem:[#allocation2 + $0x160] sm:$0xff] }
  0x37   :  { %204 = vmatpush.msrb.mxu2 %v185_v1  ;;  %238 = vmatpush.msra.mxu3 %v231_v20  ;;  %v1421_v1 = vld [vmem:[%s2248_s2 + $0x2] ss:$0 sm:$0xff]  ;;  %v267_v20 = vld [vmem:[#allocation2 + $0x1d0] sm:$0xff] }
  0x39   :  { %205 = vmatpush.msrb.mxu2 %v184_v3  ;;  %239 = vmatpush.msra.mxu3 %v230_v21  ;;  %v266_v21 = vld [vmem:[#allocation2 + $0x1c8] sm:$0xff] }
  0x3b   :  { %206 = vmatpush.msrb.mxu2 %v183_v5 }
  0x3d   :  { %207 = vmatpush.msrb.mxu2 %v182_v7  ;;  %v161_v7 = vld [vmem:[%s2249_s3] sm:$0xff] }
  0x3e   :  { %96 = vmatmul.f32.gmra.mxu0 %v40_v22  ;;  %126 = vmatmul.f32.gmra.mxu2 %v50_v23  ;;  %v229_v22 = vld [vmem:[#allocation2 + $0x158] sm:$0xff]  ;;  %v228_v23 = vld [vmem:[#allocation2 + $0x150] sm:$0xff] }
  0x3f   :  { %208 = vmatpush.msrb.mxu2 %v181_v9  ;;  %240 = vmatpush.msra.mxu3 %v229_v22  ;;  %v272_v9 = vld [vmem:[#allocation2 + $0x1f8] sm:$0xff]  ;;  %v265_v22 = vld [vmem:[#allocation2 + $0x1c0] sm:$0xff] }
  0x41   :  { %209 = vmatpush.msrb.mxu2 %v180_v11  ;;  %241 = vmatpush.msra.mxu3 %v228_v23  ;;  %v271_v11 = vld [vmem:[#allocation2 + $0x1f0] sm:$0xff] }
  0x42   :  { %v1675_v23 = vld [vmem:[%s2249_s3 + $0x10] sm:$0xff] }
  0x43   :  { %210 = vmatpush.msrb.mxu2 %v179_v13  ;;  %v270_v13 = vld [vmem:[#allocation2 + $0x1e8] sm:$0xff] }
  0x45   :  { %211 = vmatpush.msrb.mxu2 %v178_v17  ;;  %v269_v17 = vld [vmem:[#allocation2 + $0x1e0] sm:$0xff] }
  0x46   :  { %99 = vmatmul.f32.gmra.mxu0 %v41_v24  ;;  %129 = vmatmul.f32.gmra.mxu2 %v51_v25  ;;  %v227_v24 = vld [vmem:[#allocation2 + $0x148] sm:$0xff]  ;;  %v226_v25 = vld [vmem:[#allocation2 + $0x140] sm:$0xff] }
  0x47   :  { %242 = vmatpush.msra.mxu3 %v227_v24  ;;  %v264_v24 = vld [vmem:[#allocation2 + $0x1b8] sm:$0xff] }
  0x49   :  { %243 = vmatpush.msra.mxu3 %v226_v25  ;;  %v263_v25 = vld [vmem:[#allocation2 + $0x1b0] sm:$0xff] }
  0x4e   :  { %102 = vmatmul.f32.gmra.mxu0 %v42_v26  ;;  %132 = vmatmul.f32.gmra.mxu2 %v52_v27  ;;  %v225_v26 = vld [vmem:[#allocation2 + $0x138] sm:$0xff]  ;;  %v224_v27 = vld [vmem:[#allocation2 + $0x130] sm:$0xff] }
  0x4f   :  { %244 = vmatpush.msra.mxu3 %v225_v26  ;;  %v262_v26 = vld [vmem:[#allocation2 + $0x1a8] sm:$0xff] }
  0x51   :  { %245 = vmatpush.msra.mxu3 %v224_v27  ;;  %v261_v27 = vld [vmem:[#allocation2 + $0x1a0] sm:$0xff] }
  0x56   :  { %105 = vmatmul.f32.gmra.mxu0 %v43_v28  ;;  %v223_v28 = vld [vmem:[#allocation2 + $0x128] sm:$0xff] }
  0x57   :  { %246 = vmatpush.msra.mxu3 %v223_v28  ;;  %v1682_v28 = vld [vmem:[%s2249_s3 + $0x18] sm:$0xff] }
  0x5e   :  { %108 = vmatmul.f32.gmra.mxu0 %v44_v29  ;;  %v222_v29 = vld [vmem:[#allocation2 + $0x120] sm:$0xff] }
  0x5f   :  { %247 = vmatpush.msra.mxu3 %v222_v29  ;;  %v260_v29 = vld [vmem:[#allocation2 + $0x198] sm:$0xff] }
  0x66   :  { %111 = vmatmul.f32.gmra.mxu0 %v45_v30  ;;  %v221_v30 = vld [vmem:[#allocation2 + $0x118] sm:$0xff] }
  0x67   :  { %248 = vmatpush.msra.mxu3 %v221_v30  ;;  %v259_v30 = vld [vmem:[#allocation2 + $0x190] sm:$0xff] }
  0x6e   :  { %114 = vmatmul.f32.gmra.mxu0 %v46_v31 }
  0xa3   :  { %v1571_v32 = vpop.f32.mrf.mxu0 }
  0xa4   :  { %v1645_v15 = vadd.f32 %v1580_v43, %v1571_v32  ;;  %v220_v32 = vld [vmem:[#allocation2 + $0x110] sm:$0xff] }
  0xa5   :  { %249 = vmatpush.msra.mxu3 %v220_v32  ;;  %v258_v32 = vld [vmem:[#allocation2 + $0x188] sm:$0xff] }
  0xa9   :  { %v118_v33 = vpop.f32.mrf.mxu2 }
  0xaa   :  { %v1602_v52 = vadd.f32 %v1580_v43, %v118_v33  ;;  %v219_v33 = vld [vmem:[#allocation2 + $0x108] sm:$0xff] }
  0xab   :  { %v1573_v34 = vpop.f32.mrf.mxu0  ;;  %250 = vmatpush.msra.mxu3 %v219_v33  ;;  %v257_v33 = vld [vmem:[#allocation2 + $0x180] sm:$0xff] }
  0xac   :  { %v1640_v14 = vadd.f32 %v1580_v43, %v1573_v34  ;;  %v218_v34 = vld [vmem:[#allocation2 + $0x100] sm:$0xff] }
  0xad   :  { %251 = vmatpush.msra.mxu3 %v218_v34  ;;  %v1697_v34 = vld [vmem:[%s2249_s3 + $0x28] sm:$0xff] }
  0xb1   :  { %v121_v35 = vpop.f32.mrf.mxu2 }
  0xb2   :  { %v1598_v50 = vadd.f32 %v1580_v43, %v121_v35  ;;  %v137_v35 = vld [vmem:[%s2250_s4 + $0x8] sm:$0xff] }
  0xb3   :  { %v1575_v36 = vpop.f32.mrf.mxu0 }
  0xb4   :  { %v1635_v12 = vadd.f32 %v1580_v43, %v1575_v36  ;;  %v747_v36 = vld [vmem:[#allocation2 + $0x3f8] sm:$0xff] }
  0xb5   :  { %750 = vmatpush.msra.mxu2 %v747_v36  ;;  %v1713_v36 = vld [vmem:[%s2249_s3 + $0x38] sm:$0xff] }
  0xb9   :  { %v124_v37 = vpop.f32.mrf.mxu2 }
  0xba   :  { %v1594_v49 = vadd.f32 %v1580_v43, %v124_v37  ;;  %v746_v37 = vld [vmem:[#allocation2 + $0x3f0] sm:$0xff] }
  0xbb   :  { %v97_v38 = vpop.f32.mrf.mxu0  ;;  %751 = vmatpush.msra.mxu2 %v746_v37  ;;  %v1721_v37 = vld [vmem:[%s2249_s3 + $0x40] sm:$0xff] }
  0xbc   :  { %v1630_v10 = vadd.f32 %v1580_v43, %v97_v38  ;;  %v1420_v38 = vld [vmem:[%s2248_s2 + $0x1] ss:$0 sm:$0xff] }
  0xc1   :  { %v127_v39 = vpop.f32.mrf.mxu2 }
  0xc2   :  { %v1590_v48 = vadd.f32 %v1580_v43, %v127_v39 }
  0xc3   :  { %v100_v40 = vpop.f32.mrf.mxu0 }
  0xc4   :  { %v1626_v8 = vadd.f32 %v1580_v43, %v100_v40 }
  0xc9   :  { %v130_v41 = vpop.f32.mrf.mxu2 }
  0xca   :  { %v1583_v45 = vadd.f32 %v1580_v43, %v130_v41 }
  0xcb   :  { %v103_v42 = vpop.f32.mrf.mxu0 }
  0xcc   :  { %v1622_v6 = vadd.f32 %v1580_v43, %v103_v42  ;;  %v745_v42 = vld [vmem:[#allocation2 + $0x3e8] sm:$0xff] }
  0xcd   :  { %752 = vmatpush.msra.mxu2 %v745_v42  ;;  %v785_v42 = vld [vmem:[#allocation2 + $0x468] sm:$0xff] }
  0xd1   :  { %v133_v44 = vpop.f32.mrf.mxu2 }
  0xd2   :  { %v1586_v46 = vadd.f32 %v1580_v43, %v133_v44  ;;  %v743_v44 = vld [vmem:[#allocation2 + $0x3d8] sm:$0xff] }
  0xd3   :  { %v106_v47 = vpop.f32.mrf.mxu0 }
  0xd4   :  { %138 = vmatpush.msra.mxu1 %v1586_v46  ;;  %v1618_v4 = vadd.f32 %v1580_v43, %v106_v47  ;;  %v742_v47 = vld [vmem:[#allocation2 + $0x3d0] sm:$0xff] }
  0xd6   :  { %139 = vmatpush.msra.mxu1 %v1583_v45 }
  0xd8   :  { %140 = vmatpush.msra.mxu1 %v1590_v48 }
  0xda   :  { %141 = vmatpush.msra.mxu1 %v1594_v49 }
  0xdb   :  { %v109_v51 = vpop.f32.mrf.mxu0 }
  0xdc   :  { %142 = vmatpush.msra.mxu1 %v1598_v50  ;;  %v1614_v2 = vadd.f32 %v1580_v43, %v109_v51  ;;  %v741_v51 = vld [vmem:[#allocation2 + $0x3c8] sm:$0xff] }
  0xde   :  { %143 = vmatpush.msra.mxu1 %v1602_v52 }
  0xe3   :  { %v112_v55 = vpop.f32.mrf.mxu0 }
  0xe4   :  { %v1610_v0 = vadd.f32 %v1580_v43, %v112_v55  ;;  %v738_v55 = vld [vmem:[#allocation2 + $0x3b0] sm:$0xff] }
  0xeb   :  { %v115_v60 = vpop.f32.mrf.mxu0 }
  0xec   :  { %v1607_v62 = vadd.f32 %v1580_v43, %v115_v60  ;;  %v744_v43 = vld [vmem:[#allocation2 + $0x3e0] sm:$0xff]  ;;  %v733_v60 = vld [vmem:[#allocation2 + $0x388] sm:$0xff] }
  0xed   :  { %753 = vmatpush.msra.mxu2 %v744_v43  ;;  %v784_v43 = vld [vmem:[#allocation2 + $0x460] sm:$0xff] }
  0xee   :  { %144 = vmatpush.msra.mxu1 %v1607_v62 }
  0xef   :  { %754 = vmatpush.msra.mxu2 %v743_v44  ;;  %v1745_v44 = vld [vmem:[%s2249_s3 + $0x58] sm:$0xff] }
  0xf0   :  { %145 = vmatpush.msra.mxu1 %v1610_v0 }
  0xf1   :  { %755 = vmatpush.msra.mxu2 %v742_v47  ;;  %v783_v47 = vld [vmem:[#allocation2 + $0x458] sm:$0xff] }
  0xf2   :  { %146 = vmatpush.msra.mxu1 %v1614_v2 }
  0xf3   :  { %756 = vmatpush.msra.mxu2 %v741_v51  ;;  %v782_v51 = vld [vmem:[#allocation2 + $0x450] sm:$0xff] }
  0xf4   :  { %147 = vmatpush.msra.mxu1 %v1618_v4 }
  0xf5   :  { %757 = vmatpush.msra.mxu2 %v740_v53  ;;  %v781_v53 = vld [vmem:[#allocation2 + $0x448] sm:$0xff] }
  0xf6   :  { %148 = vmatpush.msra.mxu1 %v1622_v6 }
  0xf7   :  { %758 = vmatpush.msra.mxu2 %v739_v54  ;;  %v780_v54 = vld [vmem:[#allocation2 + $0x440] sm:$0xff] }
  0xf8   :  { %149 = vmatpush.msra.mxu1 %v1626_v8 }
  0xf9   :  { %759 = vmatpush.msra.mxu2 %v738_v55  ;;  %v1753_v55 = vld [vmem:[%s2249_s3 + $0x60] sm:$0xff] }
  0xfa   :  { %150 = vmatpush.msra.mxu1 %v1630_v10 }
  0xfb   :  { %760 = vmatpush.msra.mxu2 %v737_v56  ;;  %v779_v56 = vld [vmem:[#allocation2 + $0x438] sm:$0xff] }
  0xfc   :  { %151 = vmatpush.msra.mxu1 %v1635_v12 }
  0xfd   :  { %761 = vmatpush.msra.mxu2 %v736_v57  ;;  %v778_v57 = vld [vmem:[#allocation2 + $0x430] sm:$0xff] }
  0xfe   :  { %152 = vmatpush.msra.mxu1 %v1640_v14 }
  0xff   :  { %762 = vmatpush.msra.mxu2 %v735_v58  ;;  %v777_v58 = vld [vmem:[#allocation2 + $0x428] sm:$0xff] }
 0x100   :  { %153 = vmatpush.msra.mxu1 %v1645_v15 }
 0x101   :  { %154 = vmatmul.f32.vlgmr.msra.gmra.mxu1 %v1651_v16  ;;  %763 = vmatpush.msra.mxu2 %v734_v59  ;;  %v776_v59 = vld [vmem:[#allocation2 + $0x420] sm:$0xff] }
 0x103   :  { %764 = vmatpush.msra.mxu2 %v733_v60  ;;  %v1761_v60 = vld [vmem:[%s2249_s3 + $0x68] sm:$0xff] }
 0x105   :  { %765 = vmatpush.msra.mxu2 %v732_v63  ;;  %v584_v63 = vld [vmem:[#allocation2 + $0x378] sm:$0xff] }
 0x106   :  { %650 = vmatpush.msrb.mxu0 %v584_v63  ;;  %v813_v63 = vld [vmem:[#allocation2 + $0x490] sm:$0xff] }
 0x109   :  { %157 = vmatmul.f32.gmra.mxu1 %v137_v35  ;;  %v1705_v35 = vld [vmem:[%s2249_s3 + $0x30] sm:$0xff] }
 0x17e   :  { %v155_v31 = vpop.f32.mrf.mxu1 }
 0x17f   :  { %212 = vmatmul.f32.vlgmr.msrb.gmra.mxu2 %v155_v31  ;;  %v1689_v31 = vld [vmem:[%s2249_s3 + $0x20] sm:$0xff] }
 0x186   :  { %v158_v61 = vpop.f32.mrf.mxu1 }
 0x187   :  { %766 = vmatmul.f32.vlgmr.msra.gmra.mxu2 %v158_v61  ;;  %v775_v61 = vld [vmem:[#allocation2 + $0x418] sm:$0xff] }
 0x202   :  { %v213_v39 = vpop.f32.mrf.mxu2 }
 0x203   :  { %v214_v40 = vadd.f32 %v1420_v38, %v213_v39  ;;  %v1729_v38 = vld [vmem:[%s2249_s3 + $0x48] sm:$0xff]  ;;  %v1737_v39 = vld [vmem:[%s2249_s3 + $0x50] sm:$0xff] }
 0x205   :  { %v216_v41 = vmax.f32 %v214_v40, 0.0  ;;  %v787_v40 = vld [vmem:[#allocation2 + $0x478] sm:$0xff] }
 0x207   :  { %252 = vmatmul.f32.vlgmr.msra.gmra.mxu3 %v216_v41  ;;  %v786_v41 = vld [vmem:[#allocation2 + $0x470] sm:$0xff] }
 0x28a   :  { %v253_v3 = vpop.f32.mrf.mxu3 }
 0x28b   :  { %v254_v5 = vadd.f32 %v1421_v1, %v253_v3  ;;  %v774_v1 = vld [vmem:[#allocation2 + $0x410] sm:$0xff] }
 0x28c   :  { %v583_v3 = vld [vmem:[#allocation2 + $0x370] sm:$0xff] }
 0x28d   :  { %337 = vmatpush.msrb.mxu1 %v254_v5  ;;  %1414 = vmatpush.msrb.mxu3 %v254_v5  ;;  %v773_v5 = vld [vmem:[#allocation2 + $0x408] sm:$0xff] }
 0x28e   :  { %1334 = vmatmul.msk.f32.vlgmr.msrb.gmra.mxu1 %vm273_vm0, %v161_v7  ;;  %1338 = vmatmul.msk.f32.vlgmr.msrb.gmra.mxu3 %vm273_vm0, %v1689_v31  ;;  %v582_v7 = vld [vmem:[#allocation2 + $0x368] sm:$0xff] }
 0x28f   :  { %387 = vmatpush.msra.mxu1 %v272_v9  ;;  %651 = vmatpush.msrb.mxu0 %v583_v3  ;;  %v772_v9 = vld [vmem:[#allocation2 + $0x400] sm:$0xff] }
 0x291   :  { %388 = vmatpush.msra.mxu1 %v271_v11  ;;  %652 = vmatpush.msrb.mxu0 %v582_v7  ;;  %v581_v11 = vld [vmem:[#allocation2 + $0x360] sm:$0xff] }
 0x293   :  { %389 = vmatpush.msra.mxu1 %v270_v13  ;;  %v826_v13 = vld [vmem:[#allocation2 + $0x4f8] sm:$0xff]  ;;  %653 = vmatpush.msrb.mxu0 %v581_v11 }
 0x295   :  { %390 = vmatpush.msra.mxu1 %v269_v17  ;;  %v1769_v17 = vld [vmem:[%s2249_s3 + $0x70] sm:$0xff] }
 0x296   :  { %1335 = vmatmul.msk.f32.gmra.mxu1 %vm273_vm0, %v162_v18  ;;  %1339 = vmatmul.msk.f32.gmra.mxu3 %vm273_vm0, %v1697_v34  ;;  %v580_v18 = vld [vmem:[#allocation2 + $0x358] sm:$0xff] }
 0x297   :  { %391 = vmatpush.msra.mxu1 %v268_v19  ;;  %v825_v19 = vld [vmem:[#allocation2 + $0x4f0] sm:$0xff]  ;;  %654 = vmatpush.msrb.mxu0 %v580_v18 }
 0x299   :  { %392 = vmatpush.msra.mxu1 %v267_v20  ;;  %v579_v20 = vld [vmem:[#allocation2 + $0x350] sm:$0xff] }
 0x29a   :  { %655 = vmatpush.msrb.mxu0 %v579_v20 }
 0x29b   :  { %393 = vmatpush.msra.mxu1 %v266_v21  ;;  %v824_v21 = vld [vmem:[#allocation2 + $0x4e8] sm:$0xff] }
 0x29d   :  { %394 = vmatpush.msra.mxu1 %v265_v22  ;;  %v578_v22 = vld [vmem:[#allocation2 + $0x348] sm:$0xff] }
 0x29e   :  { %1336 = vmatmul.msk.f32.gmra.mxu1 %vm273_vm0, %v1675_v23  ;;  %1340 = vmatmul.msk.f32.gmra.mxu3 %vm273_vm0, %v1705_v35 }
 0x29f   :  { %395 = vmatpush.msra.mxu1 %v264_v24  ;;  %v823_v24 = vld [vmem:[#allocation2 + $0x4e0] sm:$0xff]  ;;  %656 = vmatpush.msrb.mxu0 %v578_v22 }
 0x2a1   :  { %396 = vmatpush.msra.mxu1 %v263_v25  ;;  %v577_v25 = vld [vmem:[#allocation2 + $0x340] sm:$0xff] }
 0x2a2   :  { %657 = vmatpush.msrb.mxu0 %v577_v25 }
 0x2a3   :  { %397 = vmatpush.msra.mxu1 %v262_v26  ;;  %v822_v26 = vld [vmem:[#allocation2 + $0x4d8] sm:$0xff] }
 0x2a5   :  { %398 = vmatpush.msra.mxu1 %v261_v27  ;;  %v1777_v27 = vld [vmem:[%s2249_s3 + $0x78] sm:$0xff] }
 0x2a6   :  { %1337 = vmatmul.msk.f32.gmra.mxu1 %vm273_vm0, %v1682_v28  ;;  %1341 = vmatmul.msk.f32.gmra.mxu3 %vm273_vm0, %v1713_v36 }
 0x2a7   :  { %399 = vmatpush.msra.mxu1 %v260_v29  ;;  %v576_v29 = vld [vmem:[#allocation2 + $0x338] sm:$0xff] }
 0x2a8   :  { %658 = vmatpush.msrb.mxu0 %v576_v29 }
 0x2a9   :  { %400 = vmatpush.msra.mxu1 %v259_v30  ;;  %v821_v30 = vld [vmem:[#allocation2 + $0x4d0] sm:$0xff] }
 0x2ab   :  { %401 = vmatpush.msra.mxu1 %v258_v32  ;;  %v575_v32 = vld [vmem:[#allocation2 + $0x330] sm:$0xff] }
 0x2ac   :  { %659 = vmatpush.msrb.mxu0 %v575_v32 }
 0x2ad   :  { %402 = vmatpush.msra.mxu1 %v257_v33  ;;  %v820_v33 = vld [vmem:[#allocation2 + $0x4c8] sm:$0xff] }
 0x2ae   :  { %403 = vmatmul.f32.vlgmr.msra.gmra.mxu1 %v1645_v15  ;;  %1342 = vmatmul.msk.f32.gmra.mxu3 %vm273_vm0, %v1721_v37 }
 0x2af   :  { %790 = vmatpush.msrb.mxu1 %v787_v40  ;;  %v574_v40 = vld [vmem:[#allocation2 + $0x328] sm:$0xff] }
 0x2b0   :  { %660 = vmatpush.msrb.mxu0 %v574_v40 }
 0x2b1   :  { %791 = vmatpush.msrb.mxu1 %v786_v41  ;;  %v819_v41 = vld [vmem:[#allocation2 + $0x4c0] sm:$0xff] }
 0x2b3   :  { %792 = vmatpush.msrb.mxu1 %v785_v42  ;;  %v573_v42 = vld [vmem:[#allocation2 + $0x320] sm:$0xff] }
 0x2b4   :  { %661 = vmatpush.msrb.mxu0 %v573_v42 }
 0x2b5   :  { %793 = vmatpush.msrb.mxu1 %v784_v43  ;;  %v818_v43 = vld [vmem:[#allocation2 + $0x4b8] sm:$0xff] }
 0x2b6   :  { %406 = vmatmul.f32.gmra.mxu1 %v1640_v14  ;;  %1343 = vmatmul.msk.f32.gmra.mxu3 %vm273_vm0, %v1729_v38 }
 0x2b7   :  { %794 = vmatpush.msrb.mxu1 %v783_v47  ;;  %v572_v47 = vld [vmem:[#allocation2 + $0x318] sm:$0xff] }
 0x2b8   :  { %662 = vmatpush.msrb.mxu0 %v572_v47 }
 0x2b9   :  { %795 = vmatpush.msrb.mxu1 %v782_v51  ;;  %v817_v51 = vld [vmem:[#allocation2 + $0x4b0] sm:$0xff] }
 0x2bb   :  { %796 = vmatpush.msrb.mxu1 %v781_v53  ;;  %v571_v53 = vld [vmem:[#allocation2 + $0x310] sm:$0xff] }
 0x2bc   :  { %663 = vmatpush.msrb.mxu0 %v571_v53 }
 0x2bd   :  { %797 = vmatpush.msrb.mxu1 %v780_v54  ;;  %v816_v54 = vld [vmem:[#allocation2 + $0x4a8] sm:$0xff] }
 0x2be   :  { %409 = vmatmul.f32.gmra.mxu1 %v1635_v12  ;;  %1344 = vmatmul.msk.f32.gmra.mxu3 %vm273_vm0, %v1737_v39 }
 0x2bf   :  { %798 = vmatpush.msrb.mxu1 %v779_v56 }
 0x2c1   :  { %799 = vmatpush.msrb.mxu1 %v778_v57  ;;  %v570_v57 = vld [vmem:[#allocation2 + $0x308] sm:$0xff] }
 0x2c2   :  { %664 = vmatpush.msrb.mxu0 %v570_v57 }
 0x2c3   :  { %800 = vmatpush.msrb.mxu1 %v777_v58  ;;  %v815_v58 = vld [vmem:[#allocation2 + $0x4a0] sm:$0xff] }
 0x2c5   :  { %801 = vmatpush.msrb.mxu1 %v776_v59  ;;  %v569_v59 = vld [vmem:[#allocation2 + $0x300] sm:$0xff] }
 0x2c6   :  { %412 = vmatmul.f32.gmra.mxu1 %v1630_v10  ;;  %1345 = vmatmul.msk.f32.gmra.mxu3 %vm273_vm0, %v1745_v44 }
 0x2c7   :  { %802 = vmatpush.msrb.mxu1 %v775_v61  ;;  %v814_v61 = vld [vmem:[#allocation2 + $0x498] sm:$0xff]  ;;  %665 = vmatpush.msrb.mxu0 %v569_v59 }
 0x2c9   :  { %803 = vmatpush.msrb.mxu1 %v774_v1  ;;  %v812_v1 = vld [vmem:[#allocation2 + $0x488] sm:$0xff] }
 0x2cb   :  { %804 = vmatpush.msrb.mxu1 %v773_v5  ;;  %v811_v5 = vld [vmem:[#allocation2 + $0x480] sm:$0xff] }
 0x2cd   :  { %805 = vmatpush.msrb.mxu1 %v772_v9  ;;  %v1422_v9 = vld [vmem:[%s2248_s2 + $0x5] ss:$0 sm:$0xff] }
 0x2ce   :  { %415 = vmatmul.f32.gmra.mxu1 %v1626_v8  ;;  %1346 = vmatmul.msk.f32.gmra.mxu3 %vm273_vm0, %v1753_v55 }
 0x2cf   :  { %940 = vmatpush.msra.mxu1 %v826_v13  ;;  %v767_v13 = vpop.f32.mrf.mxu2 }
 0x2d0   :  { %v768_v18 = vadd.f32 %v1422_v9, %v767_v13 }
 0x2d1   :  { %941 = vmatpush.msra.mxu1 %v825_v19 }
 0x2d2   :  { %v770_v19 = vmax.f32 %v768_v18, 0.0 }
 0x2d3   :  { %942 = vmatpush.msra.mxu1 %v824_v21 }
 0x2d5   :  { %943 = vmatpush.msra.mxu1 %v823_v24 }
 0x2d6   :  { %418 = vmatmul.f32.gmra.mxu1 %v1622_v6  ;;  %1347 = vmatmul.msk.f32.gmra.mxu3 %vm273_vm0, %v1761_v60 }
 0x2d7   :  { %944 = vmatpush.msra.mxu1 %v822_v26 }
 0x2d9   :  { %945 = vmatpush.msra.mxu1 %v821_v30 }
 0x2db   :  { %946 = vmatpush.msra.mxu1 %v820_v33 }
 0x2dd   :  { %947 = vmatpush.msra.mxu1 %v819_v41 }
 0x2de   :  { %421 = vmatmul.f32.gmra.mxu1 %v1618_v4  ;;  %1348 = vmatmul.msk.f32.gmra.mxu3 %vm273_vm0, %v1769_v17 }
 0x2df   :  { %948 = vmatpush.msra.mxu1 %v818_v43 }
 0x2e1   :  { %949 = vmatpush.msra.mxu1 %v817_v51 }
 0x2e3   :  { %950 = vmatpush.msra.mxu1 %v816_v54 }
 0x2e5   :  { %951 = vmatpush.msra.mxu1 %v815_v58 }
 0x2e6   :  { %424 = vmatmul.f32.gmra.mxu1 %v1614_v2  ;;  %1349 = vmatmul.msk.f32.gmra.mxu3 %vm273_vm0, %v1777_v27 }
 0x2e7   :  { %952 = vmatpush.msra.mxu1 %v814_v61 }
 0x2e9   :  { %953 = vmatpush.msra.mxu1 %v813_v63 }
 0x2eb   :  { %954 = vmatpush.msra.mxu1 %v812_v1 }
 0x2ed   :  { %955 = vmatpush.msra.mxu1 %v811_v5 }
 0x2ee   :  { %427 = vmatmul.f32.gmra.mxu1 %v1610_v0 }
 0x2f6   :  { %430 = vmatmul.f32.gmra.mxu1 %v1607_v62 }
 0x2fe   :  { %433 = vmatmul.f32.gmra.mxu1 %v1602_v52 }
 0x306   :  { %436 = vmatmul.f32.gmra.mxu1 %v1598_v50 }
 0x30b   :  { %v339_v56 = vpop.f32.mrf.mxu1 }
 0x30e   :  { %439 = vmatmul.f32.gmra.mxu1 %v1594_v49 }
 0x311   :  { %v351_v25 = vpop.f32.mrf.mxu3 }
 0x313   :  { %v342_v3 = vpop.f32.mrf.mxu1 }
 0x316   :  { %442 = vmatmul.f32.gmra.mxu1 %v1590_v48 }
 0x319   :  { %v354_v33 = vpop.f32.mrf.mxu3 }
 0x31b   :  { %v345_v7 = vpop.f32.mrf.mxu1 }
 0x31e   :  { %445 = vmatmul.f32.gmra.mxu1 %v1583_v45 }
 0x321   :  { %v357_v43 = vpop.f32.mrf.mxu3 }
 0x323   :  { %v348_v11 = vpop.f32.mrf.mxu1 }
 0x326   :  { %448 = vmatmul.f32.gmra.mxu1 %v1586_v46 }
 0x329   :  { %v360_v53 = vpop.f32.mrf.mxu3 }
 0x32b   :  { %v404_v20 = vpop.f32.mrf.mxu1 }
 0x32c   :  { %v1789_v21 = vadd.f32 %v404_v20, %v339_v56 }
 0x32e   :  { %v452_v22 = vmax.f32 %v1789_v21, 0.0  ;;  %806 = vmatmul.f32.vlgmr.msrb.gmra.mxu1 %v770_v19  ;;  %v1917_v21 = vld [vmem:[%s2249_s3 + $0xb8] sm:$0xff] }
 0x330   :  { %666 = vmatmul.f32.vlgmr.msrb.gmra.mxu0 %v452_v22 }
 0x331   :  { %v363_v58 = vpop.f32.mrf.mxu3 }
 0x333   :  { %v407_v24 = vpop.f32.mrf.mxu1 }
 0x334   :  { %v1794_v26 = vadd.f32 %v407_v24, %v342_v3 }
 0x336   :  { %956 = vmatmul.f32.vlgmr.msra.gmra.mxu1 %v1645_v15  ;;  %v453_v29 = vmax.f32 %v1794_v26, 0.0  ;;  %v1903_v26 = vld [vmem:[%s2249_s3 + $0xa8] sm:$0xff] }
 0x338   :  { %669 = vmatmul.f32.gmra.mxu0 %v453_v29 }
 0x33b   :  { %v410_v30 = vpop.f32.mrf.mxu1 }
 0x33c   :  { %v1800_v32 = vadd.f32 %v410_v30, %v345_v7 }
 0x33e   :  { %959 = vmatmul.f32.gmra.mxu1 %v1640_v14  ;;  %v454_v40 = vmax.f32 %v1800_v32, 0.0  ;;  %v1896_v32 = vld [vmem:[%s2249_s3 + $0xa0] sm:$0xff] }
 0x340   :  { %672 = vmatmul.f32.gmra.mxu0 %v454_v40 }
 0x343   :  { %v413_v41 = vpop.f32.mrf.mxu1 }
 0x344   :  { %v1806_v42 = vadd.f32 %v413_v41, %v348_v11 }
 0x346   :  { %962 = vmatmul.f32.gmra.mxu1 %v1635_v12  ;;  %v455_v15 = vmax.f32 %v1806_v42, 0.0  ;;  %v1135_v42 = vld [vmem:[#allocation2 + $0x670] sm:$0xff] }
 0x348   :  { %675 = vmatmul.f32.gmra.mxu0 %v455_v15 }
 0x34b   :  { %v416_v47 = vpop.f32.mrf.mxu1 }
 0x34c   :  { %v1812_v51 = vadd.f32 %v416_v47, %v351_v25 }
 0x34e   :  { %965 = vmatmul.f32.gmra.mxu1 %v1630_v10  ;;  %v456_v14 = vmax.f32 %v1812_v51, 0.0  ;;  %v1938_v51 = vld [vmem:[%s2249_s3 + $0xd0] sm:$0xff] }
 0x350   :  { %678 = vmatmul.f32.gmra.mxu0 %v456_v14 }
 0x353   :  { %v419_v54 = vpop.f32.mrf.mxu1 }
 0x354   :  { %v1818_v56 = vadd.f32 %v419_v54, %v354_v33 }
 0x356   :  { %968 = vmatmul.f32.gmra.mxu1 %v1626_v8  ;;  %v457_v12 = vmax.f32 %v1818_v56, 0.0  ;;  %v366_v8 = vpop.f32.mrf.mxu3  ;;  %v1886_v56 = vld [vmem:[%s2249_s3 + $0x98] sm:$0xff] }
 0x358   :  { %681 = vmatmul.f32.gmra.mxu0 %v457_v12 }
 0x35b   :  { %v422_v57 = vpop.f32.mrf.mxu1 }
 0x35c   :  { %v1824_v59 = vadd.f32 %v422_v57, %v357_v43 }
 0x35e   :  { %971 = vmatmul.f32.gmra.mxu1 %v1622_v6  ;;  %v458_v10 = vmax.f32 %v1824_v59, 0.0  ;;  %v369_v7 = vpop.f32.mrf.mxu3  ;;  %v1131_v59 = vld [vmem:[#allocation2 + $0x650] sm:$0xff] }
 0x360   :  { %684 = vmatmul.f32.gmra.mxu0 %v458_v10 }
 0x363   :  { %v425_v61 = vpop.f32.mrf.mxu1 }
 0x364   :  { %v1830_v63 = vadd.f32 %v425_v61, %v360_v53 }
 0x366   :  { %974 = vmatmul.f32.gmra.mxu1 %v1618_v4  ;;  %v459_v1 = vmax.f32 %v1830_v63, 0.0  ;;  %v372_v18 = vpop.f32.mrf.mxu3  ;;  %v1945_v63 = vld [vmem:[%s2249_s3 + $0xd8] sm:$0xff] }
 0x368   :  { %687 = vmatmul.f32.gmra.mxu0 %v459_v1 }
 0x36b   :  { %v428_v3 = vpop.f32.mrf.mxu1 }
 0x36c   :  { %v429_v5 = vadd.f32 %v428_v3, %v363_v58 }
 0x36e   :  { %977 = vmatmul.f32.gmra.mxu1 %v1614_v2  ;;  %v460_v6 = vmax.f32 %v429_v5, 0.0  ;;  %v375_v25 = vpop.f32.mrf.mxu3 }
 0x370   :  { %690 = vmatmul.f32.gmra.mxu0 %v460_v6 }
 0x373   :  { %v431_v9 = vpop.f32.mrf.mxu1 }
 0x374   :  { %v432_v11 = vadd.f32 %v431_v9, %v366_v8  ;;  %v1127_v9 = vld [vmem:[#allocation2 + $0x630] sm:$0xff] }
 0x376   :  { %v461_v13 = vmax.f32 %v432_v11, 0.0  ;;  %980 = vmatmul.f32.gmra.mxu1 %v1610_v0  ;;  %v378_v43 = vpop.f32.mrf.mxu3  ;;  %v1952_v11 = vld [vmem:[%s2249_s3 + $0xe0] sm:$0xff] }
 0x378   :  { %693 = vmatmul.f32.gmra.mxu0 %v461_v13 }
 0x37b   :  { %v434_v4 = vpop.f32.mrf.mxu1 }
 0x37c   :  { %v435_v19 = vadd.f32 %v434_v4, %v369_v7  ;;  %v504_v4 = vld [vmem:[#allocation2 + $0x270] sm:$0xff] }
 0x37e   :  { %v462_v20 = vmax.f32 %v435_v19, 0.0  ;;  %983 = vmatmul.f32.gmra.mxu1 %v1607_v62  ;;  %v381_v62 = vpop.f32.mrf.mxu3  ;;  %v1125_v19 = vld [vmem:[#allocation2 + $0x620] sm:$0xff] }
 0x380   :  { %696 = vmatmul.f32.gmra.mxu0 %v462_v20 }
 0x383   :  { %v437_v24 = vpop.f32.mrf.mxu1 }
 0x384   :  { %v438_v30 = vadd.f32 %v437_v24, %v372_v18  ;;  %v1126_v18 = vld [vmem:[#allocation2 + $0x628] sm:$0xff]  ;;  %v1124_v24 = vld [vmem:[#allocation2 + $0x618] sm:$0xff] }
 0x386   :  { %v463_v2 = vmax.f32 %v438_v30, 0.0  ;;  %986 = vmatmul.f32.gmra.mxu1 %v1602_v52  ;;  %v384_v52 = vpop.f32.mrf.mxu3  ;;  %v1123_v30 = vld [vmem:[#allocation2 + $0x610] sm:$0xff] }
 0x388   :  { %699 = vmatmul.f32.gmra.mxu0 %v463_v2 }
 0x38b   :  { %v440_v33 = vpop.f32.mrf.mxu1 }
 0x38c   :  { %v441_v41 = vadd.f32 %v440_v33, %v375_v25  ;;  %v502_v25 = vld [vmem:[#allocation2 + $0x260] sm:$0xff]  ;;  %v1959_v33 = vld [vmem:[%s2249_s3 + $0xe8] sm:$0xff] }
 0x38e   :  { %v464_v47 = vmax.f32 %v441_v41, 0.0  ;;  %989 = vmatmul.f32.gmra.mxu1 %v1598_v50  ;;  %v501_v41 = vld [vmem:[#allocation2 + $0x258] sm:$0xff] }
 0x390   :  { %702 = vmatmul.f32.gmra.mxu0 %v464_v47 }
 0x393   :  { %v443_v0 = vpop.f32.mrf.mxu1 }
 0x394   :  { %v444_v53 = vadd.f32 %v443_v0, %v378_v43  ;;  %v1122_v43 = vld [vmem:[#allocation2 + $0x608] sm:$0xff]  ;;  %v1121_v0 = vld [vmem:[#allocation2 + $0x600] sm:$0xff] }
 0x396   :  { %v465_v54 = vmax.f32 %v444_v53, 0.0  ;;  %992 = vmatmul.f32.gmra.mxu1 %v1594_v49  ;;  %v1423_v49 = vld [vmem:[%s2248_s2 + $0x6] ss:$0 sm:$0xff]  ;;  %v499_v53 = vld [vmem:[#allocation2 + $0x248] sm:$0xff] }
 0x398   :  { %705 = vmatmul.f32.gmra.mxu0 %v465_v54 }
 0x39b   :  { %v446_v57 = vpop.f32.mrf.mxu1 }
 0x39c   :  { %v447_v58 = vadd.f32 %v446_v57, %v381_v62  ;;  %v1966_v62 = vld [vmem:[%s2249_s3 + $0xf0] sm:$0xff]  ;;  %v497_v57 = vld [vmem:[#allocation2 + $0x238] sm:$0xff] }
 0x39e   :  { %v466_v61 = vmax.f32 %v447_v58, 0.0  ;;  %995 = vmatmul.f32.gmra.mxu1 %v1590_v48  ;;  %v1850_v48 = vld [vmem:[%s2249_s3 + $0x80] sm:$0xff]  ;;  %v496_v58 = vld [vmem:[#allocation2 + $0x230] sm:$0xff] }
 0x3a0   :  { %708 = vmatmul.f32.gmra.mxu0 %v466_v61 }
 0x3a3   :  { %v449_v8 = vpop.f32.mrf.mxu1 }
 0x3a4   :  { %v450_v3 = vadd.f32 %v449_v8, %v384_v52  ;;  %v495_v52 = vld [vmem:[#allocation2 + $0x228] sm:$0xff]  ;;  %v494_v8 = vld [vmem:[#allocation2 + $0x220] sm:$0xff] }
 0x3a6   :  { %v467_v5 = vmax.f32 %v450_v3, 0.0  ;;  %998 = vmatmul.f32.gmra.mxu1 %v1583_v45  ;;  %v1858_v45 = vld [vmem:[%s2249_s3 + $0x88] sm:$0xff]  ;;  %v1973_v3 = vld [vmem:[%s2249_s3 + $0xf8] sm:$0xff] }
 0x3a8   :  { %469 = vmatpush.msra.mxu3 %v467_v5  ;;  %711 = vmatmul.f32.gmra.mxu0 %v467_v5  ;;  %v493_v5 = vld [vmem:[#allocation2 + $0x218] sm:$0xff] }
 0x3aa   :  { %470 = vmatpush.msra.mxu3 %v466_v61 }
 0x3ab   :  { %v807_v50 = vpop.f32.mrf.mxu1 }
 0x3ac   :  { %v808_v7 = vadd.f32 %v1423_v49, %v807_v50  ;;  %471 = vmatpush.msra.mxu3 %v465_v54  ;;  %v498_v54 = vld [vmem:[#allocation2 + $0x240] sm:$0xff]  ;;  %v492_v49 = vld [vmem:[#allocation2 + $0x210] sm:$0xff]  ;;  %v491_v50 = vld [vmem:[#allocation2 + $0x208] sm:$0xff] }
 0x3ae   :  { %472 = vmatpush.msra.mxu3 %v464_v47  ;;  %890 = vmatpush.msrb.mxu2 %v808_v7  ;;  %v500_v47 = vld [vmem:[#allocation2 + $0x250] sm:$0xff] }
 0x3af   :  { %1001 = vmatmul.f32.gmra.mxu1 %v1586_v46  ;;  %1366 = vmatmul.msk.f32.vlgmr.msrb.gmra.mxu2 %vm273_vm0, %v1850_v48  ;;  %v1871_v46 = vld [vmem:[%s2249_s3 + $0x90] sm:$0xff] }
 0x3b0   :  { %473 = vmatpush.msra.mxu3 %v463_v2 }
 0x3b2   :  { %474 = vmatpush.msra.mxu3 %v462_v20  ;;  %v503_v20 = vld [vmem:[#allocation2 + $0x268] sm:$0xff] }
 0x3b3   :  { %v957_v2 = vpop.f32.mrf.mxu1 }
 0x3b4   :  { %475 = vmatpush.msra.mxu3 %v461_v13  ;;  %v505_v13 = vld [vmem:[#allocation2 + $0x278] sm:$0xff] }
 0x3b6   :  { %476 = vmatpush.msra.mxu3 %v460_v6  ;;  %v1128_v6 = vld [vmem:[#allocation2 + $0x638] sm:$0xff] }
 0x3b7   :  { %1367 = vmatmul.msk.f32.gmra.mxu2 %vm273_vm0, %v1858_v45 }
 0x3b8   :  { %477 = vmatpush.msra.mxu3 %v459_v1  ;;  %v1129_v1 = vld [vmem:[#allocation2 + $0x640] sm:$0xff] }
 0x3ba   :  { %478 = vmatpush.msra.mxu3 %v458_v10  ;;  %v1130_v10 = vld [vmem:[#allocation2 + $0x648] sm:$0xff] }
 0x3bb   :  { %v960_v61 = vpop.f32.mrf.mxu1 }
 0x3bc   :  { %479 = vmatpush.msra.mxu3 %v457_v12  ;;  %v1132_v12 = vld [vmem:[#allocation2 + $0x658] sm:$0xff] }
 0x3be   :  { %480 = vmatpush.msra.mxu3 %v456_v14  ;;  %v1133_v14 = vld [vmem:[#allocation2 + $0x660] sm:$0xff] }
 0x3bf   :  { %1368 = vmatmul.msk.f32.gmra.mxu2 %vm273_vm0, %v1871_v46 }
 0x3c0   :  { %481 = vmatpush.msra.mxu3 %v455_v15  ;;  %v1134_v15 = vld [vmem:[#allocation2 + $0x668] sm:$0xff] }
 0x3c2   :  { %482 = vmatpush.msra.mxu3 %v454_v40  ;;  %v1136_v40 = vld [vmem:[#allocation2 + $0x678] sm:$0xff] }
 0x3c3   :  { %1202 = vmatpush.msra.mxu2 %v1136_v40  ;;  %v963_v7 = vpop.f32.mrf.mxu1  ;;  %v490_v40 = vld [vmem:[#allocation2 + $0x200] sm:$0xff] }
 0x3c4   :  { %483 = vmatpush.msra.mxu3 %v453_v29  ;;  %v1931_v29 = vld [vmem:[%s2249_s3 + $0xc8] sm:$0xff] }
 0x3c5   :  { %1203 = vmatpush.msra.mxu2 %v1135_v42 }
 0x3c6   :  { %484 = vmatpush.msra.mxu3 %v452_v22  ;;  %v1924_v22 = vld [vmem:[%s2249_s3 + $0xc0] sm:$0xff] }
 0x3c7   :  { %485 = vmatmul.f32.vlgmr.msra.gmra.mxu3 %v1651_v16  ;;  %1369 = vmatmul.msk.f32.gmra.mxu2 %vm273_vm0, %v1886_v56  ;;  %v1910_v16 = vld [vmem:[%s2249_s3 + $0xb0] sm:$0xff] }
 0x3c8   :  { %1204 = vmatpush.msra.mxu2 %v1134_v15  ;;  %508 = vmatpush.msrb.mxu3 %v505_v13 }
 0x3ca   :  { %1205 = vmatpush.msra.mxu2 %v1133_v14  ;;  %509 = vmatpush.msrb.mxu3 %v504_v4 }
 0x3cb   :  { %v966_v42 = vpop.f32.mrf.mxu1 }
 0x3cc   :  { %1206 = vmatpush.msra.mxu2 %v1132_v12  ;;  %510 = vmatpush.msrb.mxu3 %v503_v20 }
 0x3ce   :  { %1207 = vmatpush.msra.mxu2 %v1131_v59  ;;  %511 = vmatpush.msrb.mxu3 %v502_v25 }
 0x3cf   :  { %1370 = vmatmul.msk.f32.gmra.mxu2 %vm273_vm0, %v1896_v32 }
 0x3d0   :  { %1208 = vmatpush.msra.mxu2 %v1130_v10  ;;  %512 = vmatpush.msrb.mxu3 %v501_v41 }
 0x3d2   :  { %1209 = vmatpush.msra.mxu2 %v1129_v1  ;;  %513 = vmatpush.msrb.mxu3 %v500_v47 }
 0x3d3   :  { %v969_v1 = vpop.f32.mrf.mxu1 }
 0x3d4   :  { %1210 = vmatpush.msra.mxu2 %v1128_v6  ;;  %514 = vmatpush.msrb.mxu3 %v499_v53 }
 0x3d6   :  { %1211 = vmatpush.msra.mxu2 %v1127_v9  ;;  %515 = vmatpush.msrb.mxu3 %v498_v54 }
 0x3d7   :  { %1371 = vmatmul.msk.f32.gmra.mxu2 %vm273_vm0, %v1903_v26 }
 0x3d8   :  { %1212 = vmatpush.msra.mxu2 %v1126_v18  ;;  %516 = vmatpush.msrb.mxu3 %v497_v57 }
 0x3da   :  { %1213 = vmatpush.msra.mxu2 %v1125_v19  ;;  %517 = vmatpush.msrb.mxu3 %v496_v58 }
 0x3db   :  { %v972_v4 = vpop.f32.mrf.mxu1 }
 0x3dc   :  { %1214 = vmatpush.msra.mxu2 %v1124_v24  ;;  %518 = vmatpush.msrb.mxu3 %v495_v52 }
 0x3de   :  { %1215 = vmatpush.msra.mxu2 %v1123_v30  ;;  %519 = vmatpush.msrb.mxu3 %v494_v8 }
 0x3df   :  { %1372 = vmatmul.msk.f32.gmra.mxu2 %vm273_vm0, %v1910_v16 }
 0x3e0   :  { %1216 = vmatpush.msra.mxu2 %v1122_v43  ;;  %520 = vmatpush.msrb.mxu3 %v493_v5 }
 0x3e2   :  { %1217 = vmatpush.msra.mxu2 %v1121_v0  ;;  %521 = vmatpush.msrb.mxu3 %v492_v49 }
 0x3e3   :  { %v975_v30 = vpop.f32.mrf.mxu1 }
 0x3e4   :  { %522 = vmatpush.msrb.mxu3 %v491_v50 }
 0x3e6   :  { %523 = vmatpush.msrb.mxu3 %v490_v40 }
 0x3e7   :  { %1373 = vmatmul.msk.f32.gmra.mxu2 %vm273_vm0, %v1917_v21 }
 0x3eb   :  { %v978_v47 = vpop.f32.mrf.mxu1 }
 0x3ef   :  { %1374 = vmatmul.msk.f32.gmra.mxu2 %vm273_vm0, %v1924_v22 }
 0x3f7   :  { %1375 = vmatmul.msk.f32.gmra.mxu2 %vm273_vm0, %v1931_v29 }
 0x3ff   :  { %1376 = vmatmul.msk.f32.gmra.mxu2 %vm273_vm0, %v1938_v51 }
 0x407   :  { %1377 = vmatmul.msk.f32.gmra.mxu2 %vm273_vm0, %v1945_v63 }
 0x40f   :  { %1378 = vmatmul.msk.f32.gmra.mxu2 %vm273_vm0, %v1952_v11 }
 0x417   :  { %1379 = vmatmul.msk.f32.gmra.mxu2 %vm273_vm0, %v1959_v33 }
 0x41f   :  { %1380 = vmatmul.msk.f32.gmra.mxu2 %vm273_vm0, %v1966_v62 }
 0x427   :  { %1381 = vmatmul.msk.f32.gmra.mxu2 %vm273_vm0, %v1973_v3 }
 0x432   :  { %v892_v15 = vpop.f32.mrf.mxu2 }
 0x433   :  { %v1977_v14 = vadd.f32 %v957_v2, %v892_v15 }
 0x435   :  { %v2252_v12 = vmax.f32 %v1977_v14, 0.0 }
 0x437   :  { %1218 = vmatmul.f32.vlgmr.msra.gmra.mxu2 %v2252_v12 }
 0x43a   :  { %v895_v59 = vpop.f32.mrf.mxu2 }
 0x43b   :  { %v1982_v10 = vadd.f32 %v960_v61, %v895_v59  ;;  %v981_v61 = vpop.f32.mrf.mxu1 }
 0x43d   :  { %v2253_v6 = vmax.f32 %v1982_v10, 0.0 }
 0x43f   :  { %1221 = vmatmul.f32.gmra.mxu2 %v2253_v6  ;;  %v540_v6 = vld [vmem:[#allocation2 + $0x2d0] sm:$0xff] }
 0x442   :  { %v898_v9 = vpop.f32.mrf.mxu2 }
 0x443   :  { %v1987_v13 = vadd.f32 %v963_v7, %v898_v9  ;;  %v984_v50 = vpop.f32.mrf.mxu1 }
 0x445   :  { %v2254_v18 = vmax.f32 %v1987_v13, 0.0 }
 0x447   :  { %1224 = vmatmul.f32.gmra.mxu2 %v2254_v18 }
 0x44a   :  { %v486_v19 = vpop.f32.mrf.mxu3  ;;  %v901_v20 = vpop.f32.mrf.mxu2 }
 0x44b   :  { %v1992_v24 = vadd.f32 %v966_v42, %v901_v20  ;;  %524 = vmatmul.f32.vlgmr.msrb.gmra.mxu3 %v486_v19  ;;  %v987_v15 = vpop.f32.mrf.mxu1 }
 0x44d   :  { %v2255_v25 = vmax.f32 %v1992_v24, 0.0 }
 0x44f   :  { %1227 = vmatmul.f32.gmra.mxu2 %v2255_v25  ;;  %v539_v25 = vld [vmem:[#allocation2 + $0x2c8] sm:$0xff] }
 0x452   :  { %v904_v2 = vpop.f32.mrf.mxu2 }
 0x453   :  { %v1997_v41 = vadd.f32 %v969_v1, %v904_v2 }
 0x455   :  { %v2256_v43 = vmax.f32 %v1997_v41, 0.0 }
 0x457   :  { %1230 = vmatmul.f32.gmra.mxu2 %v2256_v43 }
 0x45a   :  { %v907_v0 = vpop.f32.mrf.mxu2 }
 0x45b   :  { %v2002_v53 = vadd.f32 %v972_v4, %v907_v0  ;;  %v990_v4 = vpop.f32.mrf.mxu1 }
 0x45d   :  { %v2257_v54 = vmax.f32 %v2002_v53, 0.0 }
 0x45f   :  { %1233 = vmatmul.f32.gmra.mxu2 %v2257_v54  ;;  %v538_v54 = vld [vmem:[#allocation2 + $0x2c0] sm:$0xff] }
 0x462   :  { %v910_v57 = vpop.f32.mrf.mxu2 }
 0x463   :  { %v2007_v58 = vadd.f32 %v975_v30, %v910_v57  ;;  %v993_v0 = vpop.f32.mrf.mxu1 }
 0x465   :  { %v2258_v52 = vmax.f32 %v2007_v58, 0.0 }
 0x467   :  { %1236 = vmatmul.f32.gmra.mxu2 %v2258_v52  ;;  %v534_v52 = vld [vmem:[#allocation2 + $0x2a0] sm:$0xff] }
 0x46a   :  { %v913_v8 = vpop.f32.mrf.mxu2 }
 0x46b   :  { %v2012_v5 = vadd.f32 %v978_v47, %v913_v8  ;;  %v544_v8 = vld [vmem:[#allocation2 + $0x2f0] sm:$0xff]  ;;  %v996_v12 = vpop.f32.mrf.mxu1 }
 0x46d   :  { %v1012_v49 = vmax.f32 %v2012_v5, 0.0  ;;  %v2264_v5 = vmax.f32 %v1982_v10, 0.0  ;;  %v1053_v10 = vld [vmem:[#allocation2 + $0x558] sm:$0xff] }
 0x46f   :  { %1239 = vmatmul.f32.gmra.mxu2 %v1012_v49 }
 0x472   :  { %v916_v7 = vpop.f32.mrf.mxu2 }
 0x473   :  { %v2017_v40 = vadd.f32 %v981_v61, %v916_v7  ;;  %v545_v61 = vld [vmem:[#allocation2 + $0x2f8] sm:$0xff] }
 0x474   :  { %548 = vmatpush.msra.mxu3 %v545_v61  ;;  %v999_v61 = vpop.f32.mrf.mxu1 }
 0x475   :  { %v1013_v42 = vmax.f32 %v2017_v40, 0.0  ;;  %v2262_v40 = vmax.f32 %v1992_v24, 0.0  ;;  %v1052_v24 = vld [vmem:[#allocation2 + $0x550] sm:$0xff] }
 0x476   :  { %549 = vmatpush.msra.mxu3 %v544_v8  ;;  %v537_v8 = vld [vmem:[#allocation2 + $0x2b8] sm:$0xff] }
 0x477   :  { %1242 = vmatmul.f32.gmra.mxu2 %v1013_v42 }
 0x47a   :  { %v919_v59 = vpop.f32.mrf.mxu2 }
 0x47b   :  { %v2022_v1 = vadd.f32 %v984_v50, %v919_v59  ;;  %v543_v50 = vld [vmem:[#allocation2 + $0x2e8] sm:$0xff]  ;;  %v542_v59 = vld [vmem:[#allocation2 + $0x2e0] sm:$0xff] }
 0x47c   :  { %550 = vmatpush.msra.mxu3 %v543_v50  ;;  %v536_v50 = vld [vmem:[#allocation2 + $0x2b0] sm:$0xff] }
 0x47d   :  { %v1014_v9 = vmax.f32 %v2022_v1, 0.0  ;;  %v1048_v1 = vld [vmem:[#allocation2 + $0x530] sm:$0xff] }
 0x47e   :  { %551 = vmatpush.msra.mxu3 %v542_v59 }
 0x47f   :  { %1245 = vmatmul.f32.gmra.mxu2 %v1014_v9 }
 0x482   :  { %v922_v19 = vpop.f32.mrf.mxu2 }
 0x483   :  { %v2027_v20 = vadd.f32 %v987_v15, %v922_v19 }
 0x485   :  { %v1015_v30 = vmax.f32 %v2027_v20, 0.0  ;;  %v2261_v20 = vmax.f32 %v1997_v41, 0.0  ;;  %v1051_v41 = vld [vmem:[#allocation2 + $0x548] sm:$0xff] }
 0x487   :  { %1248 = vmatmul.f32.gmra.mxu2 %v1015_v30 }
 0x48a   :  { %v925_v2 = vpop.f32.mrf.mxu2 }
 0x48b   :  { %v2032_v47 = vadd.f32 %v990_v4, %v925_v2  ;;  %v541_v2 = vld [vmem:[#allocation2 + $0x2d8] sm:$0xff] }
 0x48c   :  { %552 = vmatpush.msra.mxu3 %v541_v2  ;;  %v532_v2 = vld [vmem:[#allocation2 + $0x290] sm:$0xff] }
 0x48d   :  { %v1016_v57 = vmax.f32 %v2032_v47, 0.0  ;;  %v2260_v47 = vmax.f32 %v2002_v53, 0.0 }
 0x48e   :  { %553 = vmatpush.msra.mxu3 %v540_v6  ;;  %v533_v6 = vld [vmem:[#allocation2 + $0x298] sm:$0xff] }
 0x48f   :  { %1251 = vmatmul.f32.gmra.mxu2 %v1016_v57 }
 0x490   :  { %554 = vmatpush.msra.mxu3 %v539_v25 }
 0x492   :  { %v928_v7 = vpop.f32.mrf.mxu2  ;;  %555 = vmatpush.msra.mxu3 %v538_v54  ;;  %v531_v54 = vld [vmem:[#allocation2 + $0x288] sm:$0xff] }
 0x493   :  { %v994_v15 = vadd.f32 %v993_v0, %v928_v7 }
 0x494   :  { %556 = vmatpush.msra.mxu3 %v537_v8 }
 0x495   :  { %v1017_v19 = vmax.f32 %v994_v15, 0.0  ;;  %v535_v15 = vld [vmem:[#allocation2 + $0x2a8] sm:$0xff] }
 0x496   :  { %557 = vmatpush.msra.mxu3 %v536_v50 }
 0x497   :  { %1254 = vmatmul.f32.gmra.mxu2 %v1017_v19 }
 0x498   :  { %558 = vmatpush.msra.mxu3 %v535_v15 }
 0x49a   :  { %v931_v4 = vpop.f32.mrf.mxu2  ;;  %559 = vmatpush.msra.mxu3 %v534_v52 }
 0x49b   :  { %v997_v18 = vadd.f32 %v996_v12, %v931_v4  ;;  %v1002_v12 = vpop.f32.mrf.mxu1 }
 0x49c   :  { %560 = vmatpush.msra.mxu3 %v533_v6  ;;  %v1429_v6 = vld [vmem:[%s2249_s3 + $0x8] sm:$0xff] }
 0x49d   :  { %v1018_v43 = vmax.f32 %v997_v18, 0.0 }
 0x49e   :  { %561 = vmatpush.msra.mxu3 %v532_v2 }
 0x49f   :  { %1257 = vmatmul.f32.gmra.mxu2 %v1018_v43 }
 0x4a0   :  { %562 = vmatpush.msra.mxu3 %v531_v54  ;;  %v1042_v54 = vld [vmem:[#allocation2 + $0x500] sm:$0xff] }
 0x4a2   :  { %v934_v0 = vpop.f32.mrf.mxu2 }
 0x4a3   :  { %v1000_v7 = vadd.f32 %v999_v61, %v934_v0  ;;  %v530_v61 = vld [vmem:[#allocation2 + $0x280] sm:$0xff] }
 0x4a4   :  { %563 = vmatpush.msra.mxu3 %v530_v61  ;;  %v1424_v0 = vld [vmem:[%s2248_s2 + $0x3] ss:$0 sm:$0xff]  ;;  %v1097_v61 = vld [vmem:[#allocation2 + $0x5f8] sm:$0xff] }
 0x4a5   :  { %v1019_v59 = vmax.f32 %v1000_v7, 0.0  ;;  %v1425_v7 = vld [vmem:[%s2248_s2 + $0x4] ss:$0 sm:$0xff] }
 0x4a7   :  { %1260 = vmatmul.f32.gmra.mxu2 %v1019_v59 }
 0x4aa   :  { %v937_v18 = vpop.f32.mrf.mxu2 }
 0x4ab   :  { %v1003_v4 = vadd.f32 %v1002_v12, %v937_v18  ;;  %v1428_v18 = vld [vmem:[%s2249_s3] sm:$0xff] }
 0x4ad   :  { %v1020_v25 = vmax.f32 %v1003_v4, 0.0  ;;  %v1043_v4 = vld [vmem:[#allocation2 + $0x508] sm:$0xff] }
 0x4af   :  { %1263 = vmatmul.f32.gmra.mxu2 %v1020_v25 }
 0x4ce   :  { %v525_v8 = vpop.f32.mrf.mxu3 }
 0x4cf   :  { %v526_v50 = vadd.f32 %v1424_v0, %v525_v8  ;;  %v1096_v0 = vld [vmem:[#allocation2 + $0x5f0] sm:$0xff]  ;;  %v1095_v8 = vld [vmem:[#allocation2 + $0x5e8] sm:$0xff] }
 0x4d1   :  { %v528_v52 = vmax.f32 %v526_v50, 0.0  ;;  %v1094_v50 = vld [vmem:[#allocation2 + $0x5e0] sm:$0xff] }
 0x4d3   :  { %564 = vmatmul.f32.vlgmr.msra.gmra.mxu3 %v528_v52  ;;  %v1093_v52 = vld [vmem:[#allocation2 + $0x5d8] sm:$0xff] }
 0x556   :  { %v565_v15 = vpop.f32.mrf.mxu3 }
 0x557   :  { %v566_v12 = vadd.f32 %v1425_v7, %v565_v15  ;;  %v1092_v15 = vld [vmem:[#allocation2 + $0x5d0] sm:$0xff] }
 0x559   :  { %600 = vmatpush.msrb.mxu3 %v566_v12 }
 0x55a   :  { %1350 = vmatmul.msk.f32.vlgmr.msrb.gmra.mxu3 %vm273_vm0, %v1428_v18  ;;  %v1091_v18 = vld [vmem:[#allocation2 + $0x5c8] sm:$0xff] }
 0x55b   :  { %1021 = vmatpush.msra.mxu3 %v1020_v25  ;;  %v2130_v25 = vpop.f32.mrf.mxu0 }
 0x55d   :  { %1022 = vmatpush.msra.mxu3 %v1019_v59  ;;  %v1044_v59 = vld [vmem:[#allocation2 + $0x510] sm:$0xff] }
 0x55f   :  { %1023 = vmatpush.msra.mxu3 %v1018_v43  ;;  %v2259_v43 = vmax.f32 %v2007_v58, 0.0  ;;  %v2265_v58 = vmax.f32 %v1977_v14, 0.0 }
 0x561   :  { %1024 = vmatpush.msra.mxu3 %v1017_v19  ;;  %v1045_v19 = vld [vmem:[#allocation2 + $0x518] sm:$0xff] }
 0x562   :  { %1351 = vmatmul.msk.f32.gmra.mxu3 %vm273_vm0, %v1429_v6  ;;  %v1090_v6 = vld [vmem:[#allocation2 + $0x5c0] sm:$0xff] }
 0x563   :  { %1025 = vmatpush.msra.mxu3 %v1016_v57  ;;  %v1046_v57 = vld [vmem:[#allocation2 + $0x520] sm:$0xff]  ;;  %v2136_v12 = vpop.f32.mrf.mxu0 }
 0x565   :  { %1026 = vmatpush.msra.mxu3 %v1015_v30 }
 0x567   :  { %1027 = vmatpush.msra.mxu3 %v1014_v9  ;;  %v1047_v9 = vld [vmem:[#allocation2 + $0x528] sm:$0xff] }
 0x569   :  { %1028 = vmatpush.msra.mxu3 %v1013_v42  ;;  %v1049_v42 = vld [vmem:[#allocation2 + $0x538] sm:$0xff] }
 0x56a   :  { %1352 = vmatmul.msk.f32.gmra.mxu3 %vm273_vm0, %v1675_v23  ;;  %v2263_v23 = vmax.f32 %v1987_v13, 0.0 }
 0x56b   :  { %1029 = vmatpush.msra.mxu3 %v1012_v49  ;;  %v1050_v49 = vld [vmem:[#allocation2 + $0x540] sm:$0xff] }
 0x56d   :  { %1030 = vmatpush.msra.mxu3 %v2259_v43  ;;  %v1089_v43 = vld [vmem:[#allocation2 + $0x5b8] sm:$0xff] }
 0x56f   :  { %1031 = vmatpush.msra.mxu3 %v2260_v47 }
 0x571   :  { %1032 = vmatpush.msra.mxu3 %v2261_v20  ;;  %v1088_v20 = vld [vmem:[#allocation2 + $0x5b0] sm:$0xff] }
 0x572   :  { %1353 = vmatmul.msk.f32.gmra.mxu3 %vm273_vm0, %v1682_v28  ;;  %v1430_v28 = vld [vmem:[%s2250_s4 + $0x8] sm:$0xff] }
 0x573   :  { %1033 = vmatpush.msra.mxu3 %v2262_v40  ;;  %v1087_v40 = vld [vmem:[#allocation2 + $0x5a8] sm:$0xff] }
 0x575   :  { %1034 = vmatpush.msra.mxu3 %v2263_v23  ;;  %v2140_v23 = vpop.f32.mrf.mxu0 }
 0x577   :  { %1035 = vmatpush.msra.mxu3 %v2264_v5  ;;  %v1086_v5 = vld [vmem:[#allocation2 + $0x5a0] sm:$0xff] }
 0x579   :  { %1036 = vmatpush.msra.mxu3 %v2265_v58  ;;  %v1085_v58 = vld [vmem:[#allocation2 + $0x598] sm:$0xff] }
 0x57a   :  { %1354 = vmatmul.msk.f32.gmra.mxu3 %vm273_vm0, %v1689_v31 }
 0x57b   :  { %1100 = vmatpush.msrb.mxu3 %v1097_v61 }
 0x57d   :  { %1101 = vmatpush.msrb.mxu3 %v1096_v0  ;;  %v1426_v0 = vld [vmem:[%s2248_s2 + $0x7] ss:$0 sm:$0xff] }
 0x57f   :  { %1102 = vmatpush.msrb.mxu3 %v1095_v8 }
 0x581   :  { %1103 = vmatpush.msrb.mxu3 %v1094_v50 }
 0x582   :  { %1355 = vmatmul.msk.f32.gmra.mxu3 %vm273_vm0, %v1697_v34 }
 0x583   :  { %1104 = vmatpush.msrb.mxu3 %v1093_v52 }
 0x585   :  { %1105 = vmatpush.msrb.mxu3 %v1092_v15  ;;  %v1427_v15 = vld [vmem:[%s2248_s2 + $0x8] ss:$0 sm:$0xff]  ;;  %s1486_s2 = smov [#allocation5]  }
 0x586   :  { %s1319_s21 = sshll.u32 %s1486_s2, 4  ;;  %s1320_s21 = int_to_ptr.vmem [resolvable:$true] %s1319_s21 }
 0x587   :  { %1106 = vmatpush.msrb.mxu3 %v1091_v18 }
 0x589   :  { %1107 = vmatpush.msrb.mxu3 %v1090_v6 }
 0x58a   :  { %1356 = vmatmul.msk.f32.gmra.mxu3 %vm273_vm0, %v1705_v35 }
 0x58b   :  { %1108 = vmatpush.msrb.mxu3 %v1089_v43 }
 0x58d   :  { %1109 = vmatpush.msrb.mxu3 %v1088_v20 }
 0x58f   :  { %1110 = vmatpush.msrb.mxu3 %v1087_v40 }
 0x591   :  { %1111 = vmatpush.msrb.mxu3 %v1086_v5 }
 0x592   :  { %1357 = vmatmul.msk.f32.gmra.mxu3 %vm273_vm0, %v1713_v36 }
 0x593   :  { %1112 = vmatpush.msrb.mxu3 %v1085_v58 }
 0x59a   :  { %1358 = vmatmul.msk.f32.gmra.mxu3 %vm273_vm0, %v1721_v37 }
 0x5a2   :  { %1359 = vmatmul.msk.f32.gmra.mxu3 %vm273_vm0, %v1729_v38  ;;  %v1057_v38 = vld [vmem:[#allocation2 + $0x578] sm:$0xff] }
 0x5a3   :  { %1060 = vmatpush.msra.mxu0 %v1057_v38  ;;  %v2144_v38 = vpop.f32.mrf.mxu0 }
 0x5aa   :  { %1360 = vmatmul.msk.f32.gmra.mxu3 %vm273_vm0, %v1737_v39 }
 0x5b2   :  { %1361 = vmatmul.msk.f32.gmra.mxu3 %vm273_vm0, %v1745_v44  ;;  %v1056_v44 = vld [vmem:[#allocation2 + $0x570] sm:$0xff] }
 0x5b3   :  { %1061 = vmatpush.msra.mxu0 %v1056_v44 }
 0x5ba   :  { %1362 = vmatmul.msk.f32.gmra.mxu3 %vm273_vm0, %v1753_v55 }
 0x5c2   :  { %1363 = vmatmul.msk.f32.gmra.mxu3 %vm273_vm0, %v1761_v60  ;;  %v1055_v60 = vld [vmem:[#allocation2 + $0x568] sm:$0xff] }
 0x5c3   :  { %1062 = vmatpush.msra.mxu0 %v1055_v60  ;;  %v2146_v60 = vpop.f32.mrf.mxu0 }
 0x5ca   :  { %1364 = vmatmul.msk.f32.gmra.mxu3 %vm273_vm0, %v1769_v17 }
 0x5d2   :  { %1365 = vmatmul.msk.f32.gmra.mxu3 %vm273_vm0, %v1777_v27  ;;  %v1054_v27 = vld [vmem:[#allocation2 + $0x560] sm:$0xff] }
 0x5d3   :  { %1063 = vmatpush.msra.mxu0 %v1054_v27  ;;  %v2148_v27 = vpop.f32.mrf.mxu0 }
 0x5d5   :  { %1064 = vmatpush.msra.mxu0 %v1053_v10 }
 0x5d7   :  { %1065 = vmatpush.msra.mxu0 %v1052_v24 }
 0x5d9   :  { %1066 = vmatpush.msra.mxu0 %v1051_v41 }
 0x5da   :  { %1037 = vmatmul.f32.vlgmr.msra.gmra.mxu3 %v1430_v28 }
 0x5db   :  { %1067 = vmatpush.msra.mxu0 %v1050_v49  ;;  %v2150_v10 = vpop.f32.mrf.mxu0 }
 0x5dd   :  { %v2106_v31 = vpop.f32.mrf.mxu3  ;;  %1068 = vmatpush.msra.mxu0 %v1049_v42 }
 0x5df   :  { %1069 = vmatpush.msra.mxu0 %v1048_v1 }
 0x5e1   :  { %1070 = vmatpush.msra.mxu0 %v1047_v9 }
 0x5e3   :  { %1071 = vmatpush.msra.mxu0 %v1046_v57  ;;  %v2152_v24 = vpop.f32.mrf.mxu0  ;;  %v1084_v57 = vld [vmem:[#allocation2 + $0x590] sm:$0xff] }
 0x5e4   :  { %1113 = vmatpush.msrb.mxu3 %v1084_v57 }
 0x5e5   :  { %v2108_v34 = vpop.f32.mrf.mxu3  ;;  %1072 = vmatpush.msra.mxu0 %v1045_v19  ;;  %v1083_v19 = vld [vmem:[#allocation2 + $0x588] sm:$0xff] }
 0x5e6   :  { %1114 = vmatpush.msrb.mxu3 %v1083_v19 }
 0x5e7   :  { %1073 = vmatpush.msra.mxu0 %v1044_v59  ;;  %v1082_v59 = vld [vmem:[#allocation2 + $0x580] sm:$0xff] }
 0x5e8   :  { %1115 = vmatpush.msrb.mxu3 %v1082_v59 }
 0x5e9   :  { %1074 = vmatpush.msra.mxu0 %v1043_v4 }
 0x5eb   :  { %1075 = vmatpush.msra.mxu0 %v1042_v54  ;;  %v2154_v41 = vpop.f32.mrf.mxu0 }
 0x5ed   :  { %v2110_v35 = vpop.f32.mrf.mxu3 }
 0x5f3   :  { %v2156_v49 = vpop.f32.mrf.mxu0 }
 0x5f5   :  { %v2112_v36 = vpop.f32.mrf.mxu3 }
 0x5f6   :  { %v677_v58 = vadd.f32 %v2144_v38, %v2112_v36 }
 0x5fb   :  { %v2158_v42 = vpop.f32.mrf.mxu0 }
 0x5fd   :  { %v2114_v37 = vpop.f32.mrf.mxu3 }
 0x5fe   :  { %v680_v59 = vadd.f32 %v2146_v60, %v2114_v37 }
 0x603   :  { %v2160_v1 = vpop.f32.mrf.mxu0 }
 0x605   :  { %v2116_v39 = vpop.f32.mrf.mxu3 }
 0x60b   :  { %v2162_v9 = vpop.f32.mrf.mxu0 }
 0x60d   :  { %v2118_v55 = vpop.f32.mrf.mxu3 }
 0x613   :  { %v2164_v4 = vpop.f32.mrf.mxu0 }
 0x615   :  { %v2120_v17 = vpop.f32.mrf.mxu3 }
 0x61b   :  { %v2166_v54 = vpop.f32.mrf.mxu0 }
 0x61d   :  { %v2122_v14 = vpop.f32.mrf.mxu3 }
 0x623   :  { %v2168_v61 = vpop.f32.mrf.mxu0 }
 0x625   :  { %v2124_v13 = vpop.f32.mrf.mxu3 }
 0x62d   :  { %v2126_v53 = vpop.f32.mrf.mxu3 }
 0x635   :  { %v2128_v30 = vpop.f32.mrf.mxu3 }
 0x63d   :  { %v2132_v2 = vpop.f32.mrf.mxu3 }
 0x645   :  { %v2134_v7 = vpop.f32.mrf.mxu3 }
 0x64d   :  { %v2138_v47 = vpop.f32.mrf.mxu3 }
 0x655   :  { %v2142_v28 = vpop.f32.mrf.mxu3 }
 0x65d   :  { %v1038_v44 = vpop.f32.mrf.mxu3 }
 0x65e   :  { %1076 = vmatmul.f32.vlgmr.msra.gmra.mxu0 %v1038_v44 }
 0x6db   :  { %v1077_v8 = vpop.f32.mrf.mxu0 }
 0x6dc   :  { %v1078_v50 = vadd.f32 %v1426_v0, %v1077_v8 }
 0x6de   :  { %v1080_v52 = vmax.f32 %v1078_v50, 0.0 }
 0x6e0   :  { %1116 = vmatmul.f32.vlgmr.msrb.gmra.mxu3 %v1080_v52  ;;  %v683_v52 = vadd.f32 %v2148_v27, %v2116_v39 }
 0x763   :  { %v1117_v18 = vpop.f32.mrf.mxu3 }
 0x764   :  { %v1118_v6 = vadd.f32 %v1427_v15, %v1117_v18 }
 0x766   :  { %1152 = vmatpush.msrb.mxu0 %v1118_v6  ;;  %v686_v6 = vadd.f32 %v2150_v10, %v2118_v55 }
 0x767   :  { %1382 = vmatmul.msk.f32.vlgmr.msrb.gmra.mxu0 %vm273_vm0, %v1850_v48  ;;  %v1219_v48 = vpop.f32.mrf.mxu2 }
 0x76f   :  { %1383 = vmatmul.msk.f32.gmra.mxu0 %vm273_vm0, %v1858_v45  ;;  %v1222_v45 = vpop.f32.mrf.mxu2 }
 0x777   :  { %1384 = vmatmul.msk.f32.gmra.mxu0 %vm273_vm0, %v1871_v46  ;;  %v1225_v46 = vpop.f32.mrf.mxu2 }
 0x77f   :  { %1385 = vmatmul.msk.f32.gmra.mxu0 %vm273_vm0, %v1886_v56  ;;  %v1228_v56 = vpop.f32.mrf.mxu2 }
 0x787   :  { %1386 = vmatmul.msk.f32.gmra.mxu0 %vm273_vm0, %v1896_v32 }
 0x78f   :  { %1387 = vmatmul.msk.f32.gmra.mxu0 %vm273_vm0, %v1903_v26  ;;  %v668_v26 = vadd.f32 %v2130_v25, %v2106_v31 }
 0x797   :  { %1388 = vmatmul.msk.f32.gmra.mxu0 %vm273_vm0, %v1910_v16 }
 0x79f   :  { %1389 = vmatmul.msk.f32.gmra.mxu0 %vm273_vm0, %v1917_v21 }
 0x7a7   :  { %1390 = vmatmul.msk.f32.gmra.mxu0 %vm273_vm0, %v1924_v22 }
 0x7af   :  { %1391 = vmatmul.msk.f32.gmra.mxu0 %vm273_vm0, %v1931_v29 }
 0x7b7   :  { %1392 = vmatmul.msk.f32.gmra.mxu0 %vm273_vm0, %v1938_v51  ;;  %v671_v51 = vadd.f32 %v2136_v12, %v2108_v34 }
 0x7bf   :  { %1393 = vmatmul.msk.f32.gmra.mxu0 %vm273_vm0, %v1945_v63 }
 0x7c7   :  { %1394 = vmatmul.msk.f32.gmra.mxu0 %vm273_vm0, %v1952_v11  ;;  %v1231_v11 = vpop.f32.mrf.mxu2 }
 0x7cf   :  { %1395 = vmatmul.msk.f32.gmra.mxu0 %vm273_vm0, %v1959_v33  ;;  %v1234_v31 = vpop.f32.mrf.mxu2 }
 0x7d7   :  { %1396 = vmatmul.msk.f32.gmra.mxu0 %vm273_vm0, %v1966_v62  ;;  %v1237_v57 = vpop.f32.mrf.mxu2 }
 0x7df   :  { %1397 = vmatmul.msk.f32.gmra.mxu0 %vm273_vm0, %v1973_v3  ;;  %v674_v3 = vadd.f32 %v2140_v23, %v2110_v35  ;;  %v1240_v8 = vpop.f32.mrf.mxu2 }
 0x7e4   :  { %v1154_v32 = vpop.f32.mrf.mxu0 }
 0x7e5   :  { %v1220_v16 = vadd.f32 %v1219_v48, %v1154_v32 }
 0x7e7   :  { %v1267_v21 = vadd.f32 %v1220_v16, %v668_v26 }
 0x7e9   :  { %v1283_v22 = vmul.f32 0.5, %v1267_v21  ;;  %v692_v21 = vadd.f32 %v2154_v41, %v2122_v14 }
 0x7eb   :  { %1299 = vst [vmem:[#allocation5] sm:$0xff] %v1283_v22 }
 0x7ec   :  { %v1157_v29 = vpop.f32.mrf.mxu0 }
 0x7ed   :  { %v1223_v63 = vadd.f32 %v1222_v45, %v1157_v29  ;;  %v1243_v45 = vpop.f32.mrf.mxu2 }
 0x7ef   :  { %v1268_v33 = vadd.f32 %v1223_v63, %v671_v51  ;;  %v695_v63 = vadd.f32 %v2156_v49, %v2124_v13 }
 0x7f1   :  { %v1284_v62 = vmul.f32 0.5, %v1268_v33 }
 0x7f3   :  { %1300 = vst [vmem:[#allocation5 + $0x8] sm:$0xff] %v1284_v62 }
 0x7f4   :  { %v1160_v43 = vpop.f32.mrf.mxu0 }
 0x7f5   :  { %v1226_v20 = vadd.f32 %v1225_v46, %v1160_v43  ;;  %v1246_v39 = vpop.f32.mrf.mxu2  ;;  %v698_v43 = vadd.f32 %v2158_v42, %v2126_v53 }
 0x7f7   :  { %v1269_v40 = vadd.f32 %v1226_v20, %v674_v3 }
 0x7f9   :  { %v1285_v25 = vmul.f32 0.5, %v1269_v40  ;;  %v701_v40 = vadd.f32 %v2160_v1, %v2128_v30 }
 0x7fb   :  { %1301 = vst [vmem:[#allocation5 + $0x10] sm:$0xff] %v1285_v25 }
 0x7fc   :  { %v1163_v5 = vpop.f32.mrf.mxu0 }
 0x7fd   :  { %v1229_v44 = vadd.f32 %v1228_v56, %v1163_v5  ;;  %v689_v56 = vadd.f32 %v2152_v24, %v2120_v17  ;;  %v1249_v29 = vpop.f32.mrf.mxu2 }
 0x7ff   :  { %v1270_v34 = vadd.f32 %v1229_v44, %v677_v58  ;;  %v704_v58 = vadd.f32 %v2162_v9, %v2132_v2 }
 0x801   :  { %v1286_v12 = vmul.f32 0.5, %v1270_v34 }
 0x803   :  { %1302 = vst [vmem:[#allocation5 + $0x18] sm:$0xff] %v1286_v12 }
 0x804   :  { %v1166_v19 = vpop.f32.mrf.mxu0 }
 0x805   :  { %v1232_v0 = vadd.f32 %v1231_v11, %v1166_v19  ;;  %v1252_v33 = vpop.f32.mrf.mxu2 }
 0x807   :  { %v1271_v35 = vadd.f32 %v1232_v0, %v680_v59 }
 0x809   :  { %v1287_v23 = vmul.f32 0.5, %v1271_v35  ;;  %v710_v35 = vadd.f32 %v2166_v54, %v2138_v47 }
 0x80b   :  { %1303 = vst [vmem:[#allocation5 + $0x20] sm:$0xff] %v1287_v23 }
 0x80c   :  { %v1169_v50 = vpop.f32.mrf.mxu0 }
 0x80d   :  { %v1235_v15 = vadd.f32 %v1234_v31, %v1169_v50  ;;  %v1255_v25 = vpop.f32.mrf.mxu2 }
 0x80f   :  { %v1272_v36 = vadd.f32 %v1235_v15, %v683_v52  ;;  %v713_v52 = vadd.f32 %v2168_v61, %v2142_v28 }
 0x811   :  { %v1288_v38 = vmul.f32 0.5, %v1272_v36 }
 0x813   :  { %1304 = vst [vmem:[#allocation5 + $0x28] sm:$0xff] %v1288_v38 }
 0x814   :  { %v1172_v18 = vpop.f32.mrf.mxu0 }
 0x815   :  { %v1238_v48 = vadd.f32 %v1237_v57, %v1172_v18  ;;  %v1258_v53 = vpop.f32.mrf.mxu2  ;;  %v707_v57 = vadd.f32 %v2164_v4, %v2134_v7 }
 0x817   :  { %v1273_v37 = vadd.f32 %v1238_v48, %v686_v6 }
 0x819   :  { %v1289_v60 = vmul.f32 0.5, %v1273_v37 }
 0x81b   :  { %1305 = vst [vmem:[#allocation5 + $0x30] sm:$0xff] %v1289_v60 }
 0x81c   :  { %v1175_v46 = vpop.f32.mrf.mxu0 }
 0x81d   :  { %v1241_v32 = vadd.f32 %v1240_v8, %v1175_v46  ;;  %v1261_v59 = vpop.f32.mrf.mxu2 }
 0x81f   :  { %v1274_v26 = vadd.f32 %v1241_v32, %v689_v56 }
 0x821   :  { %v1290_v27 = vmul.f32 0.5, %v1274_v26 }
 0x823   :  { %1306 = vst [vmem:[#allocation5 + $0x38] sm:$0xff] %v1290_v27 }
 0x824   :  { %v1178_v16 = vpop.f32.mrf.mxu0 }
 0x825   :  { %v1244_v22 = vadd.f32 %v1243_v45, %v1178_v16  ;;  %v1264_v8 = vpop.f32.mrf.mxu2 }
 0x827   :  { %v1275_v55 = vadd.f32 %v1244_v22, %v692_v21 }
 0x829   :  { %v1291_v10 = vmul.f32 0.5, %v1275_v55 }
 0x82b   :  { %1307 = vst [vmem:[#allocation5 + $0x40] sm:$0xff] %v1291_v10 }
 0x82c   :  { %v1181_v51 = vpop.f32.mrf.mxu0 }
 0x82d   :  { %v1247_v11 = vadd.f32 %v1246_v39, %v1181_v51 }
 0x82f   :  { %v1276_v17 = vadd.f32 %v1247_v11, %v695_v63 }
 0x831   :  { %v1292_v24 = vmul.f32 0.5, %v1276_v17 }
 0x833   :  { %1308 = vst [vmem:[#allocation5 + $0x48] sm:$0xff] %v1292_v24 }
 0x834   :  { %v1184_v62 = vpop.f32.mrf.mxu0 }
 0x835   :  { %v1250_v3 = vadd.f32 %v1249_v29, %v1184_v62 }
 0x837   :  { %v1277_v14 = vadd.f32 %v1250_v3, %v698_v43 }
 0x839   :  { %v1293_v41 = vmul.f32 0.5, %v1277_v14 }
 0x83b   :  { %1309 = vst [vmem:[#allocation5 + $0x50] sm:$0xff] %v1293_v41 }
 0x83c   :  { %v1187_v20 = vpop.f32.mrf.mxu0 }
 0x83d   :  { %v1253_v31 = vadd.f32 %v1252_v33, %v1187_v20 }
 0x83f   :  { %v1278_v13 = vadd.f32 %v1253_v31, %v701_v40 }
 0x841   :  { %v1294_v49 = vmul.f32 0.5, %v1278_v13 }
 0x843   :  { %1310 = vst [vmem:[#allocation5 + $0x58] sm:$0xff] %v1294_v49 }
 0x844   :  { %v1190_v5 = vpop.f32.mrf.mxu0 }
 0x845   :  { %v1256_v44 = vadd.f32 %v1255_v25, %v1190_v5 }
 0x847   :  { %v1279_v34 = vadd.f32 %v1256_v44, %v704_v58 }
 0x849   :  { %v1295_v42 = vmul.f32 0.5, %v1279_v34 }
 0x84b   :  { %1311 = vst [vmem:[#allocation5 + $0x60] sm:$0xff] %v1295_v42 }
 0x84c   :  { %v1193_v12 = vpop.f32.mrf.mxu0 }
 0x84d   :  { %v1259_v19 = vadd.f32 %v1258_v53, %v1193_v12 }
 0x84f   :  { %v1280_v30 = vadd.f32 %v1259_v19, %v707_v57 }
 0x851   :  { %v1296_v1 = vmul.f32 0.5, %v1280_v30 }
 0x853   :  { %1312 = vst [vmem:[#allocation5 + $0x68] sm:$0xff] %v1296_v1 }
 0x854   :  { %v1196_v0 = vpop.f32.mrf.mxu0 }
 0x855   :  { %v1262_v23 = vadd.f32 %v1261_v59, %v1196_v0 }
 0x857   :  { %v1281_v2 = vadd.f32 %v1262_v23, %v710_v35 }
 0x859   :  { %v1297_v9 = vmul.f32 0.5, %v1281_v2 }
 0x85b   :  { %1313 = vst [vmem:[#allocation5 + $0x70] sm:$0xff] %v1297_v9 }
 0x85c   :  { %v1199_v50 = vpop.f32.mrf.mxu0 }
 0x85d   :  { %v1265_v15 = vadd.f32 %v1264_v8, %v1199_v50 }
 0x85f   :  { %v1282_v7 = vadd.f32 %v1265_v15, %v713_v52 }
 0x861   :  { %v1298_v4 = vmul.f32 0.5, %v1282_v7 }
 0x863   :  { %1314 = vst [vmem:[#allocation5 + $0x78] sm:$0xff] %v1298_v4 }
 0x864   :  { %1327 = dma.vmem_to_hbm [thread:$0]  %s1320_s21, 2048, %s1322_s25, [#allocation4], %s1484_s23, %s1484_s23, %s1485_s24  }
 0x865   :  { %1481 = dma.done.wait [#allocation4], 2048  }
 0x866   :  { %1482 = vsyncadd [#allocation4], 4294965248 }
 0x867   :  { %1332 = vsyncpa [#allocation3], 1 }
 0x868   :  { %1333 = vsyncpa [#allocation4], 1 }

</bundles_post_ra>
